<compile_context>
chip_gen: v7x
topology: tpu7x:2x2x1
jax: 0.10.0
libtpu: 0.0.40
codegen_flags: <defaults>
</compile_context>

<pallas_src>
import functools

import jax
import jax.numpy as jnp
from jax.experimental import pallas as pl
from jax.experimental.pallas import tpu as pltpu

HIDDEN = 400        # PyTorch layer width
HIDDEN_PAD = 512    # padded to a multiple of 128 lanes (zero pad -> exact)


def _round_up(x, m):
    return (x + m - 1) // m * m


def _cdiv(a, b):
    return -(-a // b)


def _choose_tiling(batch, max_tb=512):
    """Pick (rows_per_step, num_steps).

    Prefer an even number of grid steps (>= 2) so the "parallel" batch axis
    shards across v7x's two TensorCores, with each step as large as possible
    (<= max_tb rows, multiple of 8 sublanes) to amortize the ~0.35us fixed
    per-grid-step overhead and fill the MXU's M dimension.
    """
    if batch <= 16:                       # too small to split usefully
        return _round_up(max(batch, 8), 8), 1
    steps = 2
    while _cdiv(batch, steps) > max_tb:
        steps += 2
    tb = _round_up(_cdiv(batch, steps), 8)
    return tb, steps


def encoder_kernel(x_ref, w1_ref, b1_ref, w2_ref, b2_ref, wh_ref, bh_ref,
                   noise_ref, out_ref, *, latent):
    # ---- layer 1: action_dim -> 512 (bf16 operands, f32 MXU accumulation) --
    h1 = jnp.dot(x_ref[...].astype(jnp.bfloat16), w1_ref[...],
                 preferred_element_type=jnp.float32) + b1_ref[...]
    h1 = jnp.maximum(h1, 0.0)

    # ---- layer 2: 512 -> 512 (dominant weight) -----------------------------
    h2 = jnp.dot(h1.astype(jnp.bfloat16), w2_ref[...],
                 preferred_element_type=jnp.float32) + b2_ref[...]
    h2 = jnp.maximum(h2, 0.0)

    # ---- fused heads, already in the output-slab column layout -------------
    # wh columns are packed [Wm | Wm | Ws | 0], bh = [bm | bm | bs | 0], so
    #   head = [mean | mean | log_std | 0]            (tb, out_cols) f32
    head = jnp.dot(h2.astype(jnp.bfloat16), wh_ref[...],
                   preferred_element_type=jnp.float32) + bh_ref[...]

    # clamp+exp only on the log_std lane group (whole-vreg VPU/EUP ops; the
    # clip bounds exp so no inf/NaN is ever produced, including on padded
    # batch rows):        slab = [mean | mean | std | 0]
    lane = jax.lax.broadcasted_iota(jnp.int32, head.shape, 1)
    is_log_std = (lane >= 2 * latent) & (lane < 3 * latent)
    slab = jnp.where(is_log_std, jnp.exp(jnp.clip(head, -4.0, 15.0)), head)

    # Reparameterization: one XLU rotate brings std into the z lane group;
    # the noise slab is zero outside lanes [0, latent), so only the z lanes
    # are perturbed:        out = [mean + std*eps | mean | std | 0]
    out_cols = head.shape[-1]
    std_in_z = pltpu.roll(slab, shift=out_cols - 2 * latent, axis=1)
    out_ref[...] = slab + std_in_z * noise_ref[...]


def encoder_forward(action, packed, noise, *, max_block_b=512):
    """action: (B, action_dim) f32; noise: (B, latent_dim) f32 std-normal.

    Returns (z, mean, std), each (B, latent_dim) f32.
    """
    B, _ = action.shape
    latent = noise.shape[1]
    out_cols = packed["wh"].shape[1]          # round_up(3 * latent, 128)

    tb, steps = _choose_tiling(B, max_block_b)
    b_pad = tb * steps

    if b_pad != B:
        action = jnp.pad(action, ((0, b_pad - B), (0, 0)))
    # Noise embedded in the slab layout: eps in lanes [0, latent), zeros
    # elsewhere, so the kernel's `slab + roll(slab) * noise` only touches the
    # z lane group.
    noise = jnp.pad(noise, ((0, b_pad - B), (0, out_cols - latent)))

    def resident(shape):
        # Weights/biases: constant block index -> DMA'd once, stay in VMEM.
        # They are double-buffered by default (~0.6 MB wasted); negligible at
        # tb <= 512 (total VMEM ~6 MB on every generation).
        # TODO(synk): pipeline_mode=pl.Buffered(1) on these specs if tb is
        # ever pushed past ~1k rows and VMEM headroom matters (v7x 64 MiB).
        return pl.BlockSpec(shape, lambda i: (0, 0))

    # TODO(synk): optionally generate eps in-kernel (pltpu.prng_seed +
    # pltpu.prng_random_bits + Box-Muller) to drop the noise input stream;
    # kept as an explicit input so the run is bit-reproducible vs. the
    # pure-JAX reference.
    kernel = functools.partial(encoder_kernel, latent=latent)

    out = pl.pallas_call(
        kernel,
        out_shape=jax.ShapeDtypeStruct((b_pad, out_cols), jnp.float32),
        grid=(steps,),
        in_specs=[
            pl.BlockSpec((tb, action.shape[1]), lambda i: (i, 0)),   # action
            resident(packed["w1"].shape),
            resident(packed["b1"].shape),
            resident(packed["w2"].shape),
            resident(packed["b2"].shape),
            resident(packed["wh"].shape),
            resident(packed["bh"].shape),
            pl.BlockSpec((tb, out_cols), lambda i: (i, 0)),          # noise slab
        ],
        out_specs=pl.BlockSpec((tb, out_cols), lambda i: (i, 0)),
        compiler_params=pltpu.CompilerParams(
            dimension_semantics=("parallel",)),
    )(action, packed["w1"], packed["b1"], packed["w2"], packed["b2"],
      packed["wh"], packed["bh"], noise)

    z = out[:B, :latent]
    mean = out[:B, latent:2 * latent]
    std = out[:B, 2 * latent:3 * latent]
    return z, mean, std


def init_encoder_params(key, action_dim, latent_dim, hidden=HIDDEN):
    """PyTorch nn.Linear default init: U(-1/sqrt(fan_in), +1/sqrt(fan_in))."""
    def linear(k, fan_in, fan_out):
        kw, kb = jax.random.split(k)
        bound = 1.0 / float(jnp.sqrt(jnp.float32(fan_in)))
        w = jax.random.uniform(kw, (fan_in, fan_out), jnp.float32, -bound, bound)
        b = jax.random.uniform(kb, (1, fan_out), jnp.float32, -bound, bound)
        return w, b

    k1, k2, k3, k4 = jax.random.split(key, 4)
    w1, b1 = linear(k1, action_dim, hidden)
    w2, b2 = linear(k2, hidden, hidden)
    wm, bm = linear(k3, hidden, latent_dim)
    ws, bs = linear(k4, hidden, latent_dim)
    return dict(w1=w1, b1=b1, w2=w2, b2=b2, wm=wm, bm=bm, ws=ws, bs=bs)


def pack_encoder_params(p, hidden_pad=HIDDEN_PAD):
    """Pad hidden 400->512 (exact: zero pad), fuse the mean/log_std heads into
    a 128-lane-wide slab-layout weight [Wm | Wm | Ws | 0], and cast the matmul
    weights to bfloat16 (f32 MXU accumulation).  Biases stay f32."""
    hidden, latent = p["wm"].shape
    dh = hidden_pad - hidden
    out_cols = _round_up(3 * latent, 128)

    w1 = jnp.pad(p["w1"], ((0, 0), (0, dh))).astype(jnp.bfloat16)   # (A, 512)
    b1 = jnp.pad(p["b1"], ((0, 0), (0, dh)))                        # (1, 512)
    w2 = jnp.pad(p["w2"], ((0, dh), (0, dh))).astype(jnp.bfloat16)  # (512, 512)
    b2 = jnp.pad(p["b2"], ((0, 0), (0, dh)))                        # (1, 512)

    wh_cols = jnp.concatenate([p["wm"], p["wm"], p["ws"]], axis=1)  # (400, 3L)
    bh_cols = jnp.concatenate([p["bm"], p["bm"], p["bs"]], axis=1)  # (1,   3L)
    wh = jnp.pad(wh_cols, ((0, dh), (0, out_cols - 3 * latent))
                 ).astype(jnp.bfloat16)                             # (512, 128)
    bh = jnp.pad(bh_cols, ((0, 0), (0, out_cols - 3 * latent)))     # (1,   128)
    return dict(w1=w1, b1=b1, w2=w2, b2=b2, wh=wh, bh=bh)


def encoder_reference(action, packed, noise):
    """Pure-JAX reference using the same packed (bf16-cast, padded) params."""
    latent = noise.shape[1]
    h1 = jnp.maximum(
        jnp.dot(action.astype(jnp.bfloat16), packed["w1"],
                preferred_element_type=jnp.float32) + packed["b1"], 0.0)
    h2 = jnp.maximum(
        jnp.dot(h1.astype(jnp.bfloat16), packed["w2"],
                preferred_element_type=jnp.float32) + packed["b2"], 0.0)
    head = jnp.dot(h2.astype(jnp.bfloat16), packed["wh"],
                   preferred_element_type=jnp.float32) + packed["bh"]
    mean = head[:, latent:2 * latent]
    log_std = jnp.clip(head[:, 2 * latent:3 * latent], -4.0, 15.0)
    std = jnp.exp(log_std)
    return mean + std * noise, mean, std


if __name__ == "__main__":
    key = jax.random.PRNGKey(0)
    k_param, k_act, k_noise = jax.random.split(key, 3)

    batch = 256
    action_dim = 16
    latent_dim = 2 * action_dim   # BCQ uses latent_dim = 2 * action_dim

    params = init_encoder_params(k_param, action_dim, latent_dim)
    packed = pack_encoder_params(params)
    action = jax.random.normal(k_act, (batch, action_dim), jnp.float32)
    # torch.randn_like(std) equivalent: standard-normal noise (device-side)
    noise = jax.random.normal(k_noise, (batch, latent_dim), jnp.float32)

    fwd = jax.jit(encoder_forward)
    z, mean, std = jax.block_until_ready(fwd(action, packed, noise))

    z_ref, mean_ref, std_ref = encoder_reference(action, packed, noise)
    assert z.shape == (batch, latent_dim)
    assert mean.shape == (batch, latent_dim)
    assert std.shape == (batch, latent_dim)
    assert jnp.allclose(mean, mean_ref, atol=1e-2, rtol=1e-2)
    assert jnp.allclose(std, std_ref, atol=1e-2, rtol=1e-2)
    assert jnp.allclose(z, z_ref, atol=1e-2, rtol=1e-2)

    print("KERNEL_OK")
</pallas_src>

<mosaic_0001>
module attributes {stable_mosaic.version = 11 : i64} {
  func.func @encoder_kernel(%arg0: i32, %arg1: memref<128x16xf32, #tpu.memory_space<vmem>>, %arg2: memref<16x512xbf16, #tpu.memory_space<vmem>>, %arg3: memref<1x512xf32, #tpu.memory_space<vmem>>, %arg4: memref<512x512xbf16, #tpu.memory_space<vmem>>, %arg5: memref<1x512xf32, #tpu.memory_space<vmem>>, %arg6: memref<512x128xbf16, #tpu.memory_space<vmem>>, %arg7: memref<1x128xf32, #tpu.memory_space<vmem>>, %arg8: memref<128x128xf32, #tpu.memory_space<vmem>>, %arg9: memref<128x128xf32, #tpu.memory_space<vmem>>) attributes {dimension_semantics = [#tpu.dimension_semantics<parallel>], iteration_bounds = array<i64: 2>, scalar_prefetch = 0 : i64, scratch_operands = 0 : i64, tpu.core_type = #tpu.core_type<tc>, window_params = [{transform_indices = @transform_0, window_bounds = array<i64: 128, 16>}, {pipeline_mode = #tpu.pipeline_mode<synchronous>, transform_indices = @transform_1, window_bounds = array<i64: 16, 512>}, {pipeline_mode = #tpu.pipeline_mode<synchronous>, transform_indices = @transform_2, window_bounds = array<i64: 1, 512>}, {pipeline_mode = #tpu.pipeline_mode<synchronous>, transform_indices = @transform_3, window_bounds = array<i64: 512, 512>}, {pipeline_mode = #tpu.pipeline_mode<synchronous>, transform_indices = @transform_4, window_bounds = array<i64: 1, 512>}, {pipeline_mode = #tpu.pipeline_mode<synchronous>, transform_indices = @transform_5, window_bounds = array<i64: 512, 128>}, {pipeline_mode = #tpu.pipeline_mode<synchronous>, transform_indices = @transform_6, window_bounds = array<i64: 1, 128>}, {transform_indices = @transform_7, window_bounds = array<i64: 128, 128>}, {transform_indices = @transform_8, window_bounds = array<i64: 128, 128>}]} {
    %c0 = arith.constant 0 : index
    %c0_0 = arith.constant 0 : index
    %0 = vector.load %arg1[%c0, %c0_0] : memref<128x16xf32, #tpu.memory_space<vmem>>, vector<128x16xf32>
    %1 = arith.truncf %0 : vector<128x16xf32> to vector<128x16xbf16>
    %c0_1 = arith.constant 0 : index
    %c0_2 = arith.constant 0 : index
    %2 = vector.load %arg2[%c0_1, %c0_2] : memref<16x512xbf16, #tpu.memory_space<vmem>>, vector<16x512xbf16>
    %cst = arith.constant dense<0.000000e+00> : vector<128x512xf32>
    %3 = tpu.matmul %1, %2, %cst {dimension_numbers = #tpu.dot_dimension_numbers<[1], [0], [0], [1], [0, 0, 1, 1], [], []>} : vector<128x16xbf16>, vector<16x512xbf16>, vector<128x512xf32> -> vector<128x512xf32>
    %c0_3 = arith.constant 0 : index
    %c0_4 = arith.constant 0 : index
    %4 = vector.load %arg3[%c0_3, %c0_4] : memref<1x512xf32, #tpu.memory_space<vmem>>, vector<1x512xf32>
    %5 = vector.broadcast %4 : vector<1x512xf32> to vector<128x512xf32>
    %6 = arith.addf %3, %5 : vector<128x512xf32>
    %cst_5 = arith.constant 0.000000e+00 : f32
    %7 = vector.broadcast %cst_5 : f32 to vector<128x512xf32>
    %8 = arith.maximumf %6, %7 : vector<128x512xf32>
    %9 = arith.truncf %8 : vector<128x512xf32> to vector<128x512xbf16>
    %c0_6 = arith.constant 0 : index
    %c0_7 = arith.constant 0 : index
    %10 = vector.load %arg4[%c0_6, %c0_7] : memref<512x512xbf16, #tpu.memory_space<vmem>>, vector<512x512xbf16>
    %cst_8 = arith.constant dense<0.000000e+00> : vector<128x512xf32>
    %11 = tpu.matmul %9, %10, %cst_8 {dimension_numbers = #tpu.dot_dimension_numbers<[1], [0], [0], [1], [0, 0, 1, 1], [], []>} : vector<128x512xbf16>, vector<512x512xbf16>, vector<128x512xf32> -> vector<128x512xf32>
    %c0_9 = arith.constant 0 : index
    %c0_10 = arith.constant 0 : index
    %12 = vector.load %arg5[%c0_9, %c0_10] : memref<1x512xf32, #tpu.memory_space<vmem>>, vector<1x512xf32>
    %13 = vector.broadcast %12 : vector<1x512xf32> to vector<128x512xf32>
    %14 = arith.addf %11, %13 : vector<128x512xf32>
    %cst_11 = arith.constant 0.000000e+00 : f32
    %15 = vector.broadcast %cst_11 : f32 to vector<128x512xf32>
    %16 = arith.maximumf %14, %15 : vector<128x512xf32>
    %17 = arith.truncf %16 : vector<128x512xf32> to vector<128x512xbf16>
    %c0_12 = arith.constant 0 : index
    %c0_13 = arith.constant 0 : index
    %18 = vector.load %arg6[%c0_12, %c0_13] : memref<512x128xbf16, #tpu.memory_space<vmem>>, vector<512x128xbf16>
    %cst_14 = arith.constant dense<0.000000e+00> : vector<128x128xf32>
    %19 = tpu.matmul %17, %18, %cst_14 {dimension_numbers = #tpu.dot_dimension_numbers<[1], [0], [0], [1], [0, 0, 1, 1], [], []>} : vector<128x512xbf16>, vector<512x128xbf16>, vector<128x128xf32> -> vector<128x128xf32>
    %c0_15 = arith.constant 0 : index
    %c0_16 = arith.constant 0 : index
    %20 = vector.load %arg7[%c0_15, %c0_16] : memref<1x128xf32, #tpu.memory_space<vmem>>, vector<1x128xf32>
    %21 = vector.broadcast %20 : vector<1x128xf32> to vector<128x128xf32>
    %22 = arith.addf %19, %21 : vector<128x128xf32>
    %23 = tpu.iota {dimensions = array<i32: 1>} : vector<128x128xi32>
    %c64_i32 = arith.constant 64 : i32
    %24 = vector.broadcast %c64_i32 : i32 to vector<128x128xi32>
    %25 = arith.cmpi sge, %23, %24 : vector<128x128xi32>
    %c96_i32 = arith.constant 96 : i32
    %26 = vector.broadcast %c96_i32 : i32 to vector<128x128xi32>
    %27 = arith.cmpi slt, %23, %26 : vector<128x128xi32>
    %28 = arith.andi %25, %27 : vector<128x128xi1>
    %cst_17 = arith.constant -4.000000e+00 : f32
    %cst_18 = arith.constant 1.500000e+01 : f32
    %29 = vector.broadcast %cst_17 : f32 to vector<128x128xf32>
    %30 = arith.maximumf %29, %22 : vector<128x128xf32>
    %31 = vector.broadcast %cst_18 : f32 to vector<128x128xf32>
    %32 = arith.minimumf %31, %30 : vector<128x128xf32>
    %33 = math.exp %32 : vector<128x128xf32>
    %34 = arith.select %28, %33, %22 : vector<128x128xi1>, vector<128x128xf32>
    %c64_i32_19 = arith.constant 64 : i32
    %35 = tpu.dynamic_rotate %34 by %c64_i32_19 dim 1 : vector<128x128xf32>, i32 -> vector<128x128xf32>
    %c0_20 = arith.constant 0 : index
    %c0_21 = arith.constant 0 : index
    %36 = vector.load %arg8[%c0_20, %c0_21] : memref<128x128xf32, #tpu.memory_space<vmem>>, vector<128x128xf32>
    %37 = arith.mulf %35, %36 : vector<128x128xf32>
    %38 = arith.addf %34, %37 : vector<128x128xf32>
    %c0_22 = arith.constant 0 : index
    %c0_23 = arith.constant 0 : index
    %39 = vector.load %arg9[%c0_22, %c0_23] : memref<128x128xf32, #tpu.memory_space<vmem>>, vector<128x128xf32>
    tpu.vector_store %arg9[%c0_22, %c0_23], %38 {strides = array<i32>} : memref<128x128xf32, #tpu.memory_space<vmem>>, vector<128x128xf32>,
    return
  }
  func.func @transform_0(%arg0: i32) -> (i32, i32) {
    %c0_i32 = arith.constant 0 : i32
    %c0_i32_0 = arith.constant 0 : i32
    return %arg0, %c0_i32 : i32, i32
  }
  func.func @transform_1(%arg0: i32) -> (i32, i32) {
    %c0_i32 = arith.constant 0 : i32
    %c0_i32_0 = arith.constant 0 : i32
    %c0_i32_1 = arith.constant 0 : i32
    return %c0_i32, %c0_i32_0 : i32, i32
  }
  func.func @transform_2(%arg0: i32) -> (i32, i32) {
    %c0_i32 = arith.constant 0 : i32
    %c0_i32_0 = arith.constant 0 : i32
    %c0_i32_1 = arith.constant 0 : i32
    return %c0_i32, %c0_i32_0 : i32, i32
  }
  func.func @transform_3(%arg0: i32) -> (i32, i32) {
    %c0_i32 = arith.constant 0 : i32
    %c0_i32_0 = arith.constant 0 : i32
    %c0_i32_1 = arith.constant 0 : i32
    return %c0_i32, %c0_i32_0 : i32, i32
  }
  func.func @transform_4(%arg0: i32) -> (i32, i32) {
    %c0_i32 = arith.constant 0 : i32
    %c0_i32_0 = arith.constant 0 : i32
    %c0_i32_1 = arith.constant 0 : i32
    return %c0_i32, %c0_i32_0 : i32, i32
  }
  func.func @transform_5(%arg0: i32) -> (i32, i32) {
    %c0_i32 = arith.constant 0 : i32
    %c0_i32_0 = arith.constant 0 : i32
    %c0_i32_1 = arith.constant 0 : i32
    return %c0_i32, %c0_i32_0 : i32, i32
  }
  func.func @transform_6(%arg0: i32) -> (i32, i32) {
    %c0_i32 = arith.constant 0 : i32
    %c0_i32_0 = arith.constant 0 : i32
    %c0_i32_1 = arith.constant 0 : i32
    return %c0_i32, %c0_i32_0 : i32, i32
  }
  func.func @transform_7(%arg0: i32) -> (i32, i32) {
    %c0_i32 = arith.constant 0 : i32
    %c0_i32_0 = arith.constant 0 : i32
    return %arg0, %c0_i32 : i32, i32
  }
  func.func @transform_8(%arg0: i32) -> (i32, i32) {
    %c0_i32 = arith.constant 0 : i32
    %c0_i32_0 = arith.constant 0 : i32
    return %arg0, %c0_i32 : i32, i32
  }
}

</mosaic_0001>

<bundles_post_ra>
// kernel: encoder_forward.1
= control target key start
LH: loop header
LB: loop body
LE: loop exit
PB: predicated region body
PF: predicated region fallthrough
CT: control target
= control target key end

     0   :  { %13 = vsyncpa [#allocation3], 0  ;;  %s3647_s27 = smov 0   ;;  %s4615_s0 = inlined_call_operand.vmem [shape: f32[256,16], index: 0, kind: input, shape index: {}]   ;;  %s4616_s1 = inlined_call_operand.vmem [shape: bf16[16,512], index: 1, kind: input, shape index: {}]   ;;  %s4617_s2 = inlined_call_operand.vmem [shape: f32[1,512], index: 2, kind: input, shape index: {}]   ;;  %s4618_s3 = inlined_call_operand.vmem [shape: bf16[512,512], index: 3, kind: input, shape index: {}]   ;;  %s4619_s4 = inlined_call_operand.vmem [shape: f32[1,512], index: 4, kind: input, shape index: {}]   ;;  %s4620_s5 = inlined_call_operand.hbm [shape: bf16[512,128], index: 5, kind: input, shape index: {}]   ;;  %s4621_s6 = inlined_call_operand.vmem [shape: f32[1,128], index: 6, kind: input, shape index: {}]   ;;  %s4622_s7 = inlined_call_operand.vmem [shape: f32[256,128], index: 7, kind: input, shape index: {}]   ;;  %s4623_s8 = inlined_call_operand.vmem [shape: f32[256,128], index: 8, kind: output, shape index: {}]  }
   0x1 LB: > { %s2820_s28 = sadd.s32 4294967295, %s3595_s27   ;;  %p2822_p0 = scmp.ge.s32.totalorder %s3595_s27, 1  ;;  %s3595_s27 = sphi %s3647_s27, %s19_s27  }
   0x2   : > { %p228_p1 = scmp.lt.s32.totalorder %s3595_s27, 3  ;;  %s3597_s29 = smov [#allocation2]  }
   0x3   : > { %s252_s30 = sshll.u32 %s3597_s29, 4  ;;  %p3661_p3 = scmp.eq.s32.totalorder %s2820_s28, 0  ;;  %s253_s30 = int_to_ptr.vmem [resolvable:$true] %s252_s30 }
   0x4   : > { %p3655_p2 = pnand %p2822_p0, %p228_p1  ;;  %s3557_s14 = scalar_lea.hbm %s4620_s5, 4096 }
   0x5   : > { %s4628_s10 = scalar_select %p3661_p3, 1, 0 }
   0x6   : > { %s4627_s9 = scalar_select %p3655_p2, 1, 0 }
   0x7   : > { %p3276_p4 = pneg %p3655_p2  ;;  %p3558_p6 = scmp.ne.s32.totalorder %s4620_s5, %s3557_s14 }
   0x8   : > { %p3564_p10 = scmp.lt.u32.totalorder %s3557_s14, %s4620_s5 }
   0x9   : > { %p3669_p5 = pnand %p3661_p3, %p3276_p4 }
   0xb   : > { %p3559_p7 = pneg %p3669_p5 }
   0xd   : > { %p3560_p8 = pnand %p3559_p7, %p3558_p6 }
   0xf   : > { %p3561_p9 = pneg %p3560_p8 }
  0x11   : > { %p3566_p11 = pnand %p3564_p10, %p3561_p9 }
  0x13   : > { %3569 = shalt.err (!%p3566_p11)
}
  0x14   : > { %s3570_s19 = scalar_lea.vmem %s253_s30, 4096  ;;  %p3578_p1 = scmp.lt.s32.totalorder %s253_s30, %s253_s30 }
  0x15   : > { %p3571_p12 = scmp.ne.s32.totalorder %s253_s30, %s3570_s19  ;;  %p3579_p4 = scmp.lt.s32.totalorder %s3570_s19, %s3570_s19 }
  0x17   : > { %p3573_p13 = pnand %p3571_p12, %p3559_p7  ;;  %p3580_p3 = por %p3579_p4, %p3578_p1 }
  0x19   : > { %p3574_p0 = pneg %p3573_p13 }
  0x1b   : > { %p3581_p2 = pnand %p3580_p3, %p3574_p0 }
  0x1d   : > { %3584 = shalt.err (!%p3581_p2)
}
  0x1e   : > { %s3598_s20 = smov 64   ;;  %s3599_s21 = smov 4  }
  0x1f   : > { %3279 = dma.hbm_to_vmem [thread:$0]  (!%p3669_p5), %s4620_s5, 4096, %s253_s30, [#allocation3], %s3598_s20, %s3598_s20, %s3599_s21  }
  0x20   : > { %p4630_p6 = scmp.ne.s32.totalorder %s4627_s9, 0 }
  0x21   : > { %p4631_p8 = scmp.ne.s32.totalorder (!%p4630_p6), %s4628_s10, 0 }
  0x22   : > { %289 = sbr.rel (%p4630_p6) target bundleno = 975 (0x3cf), region = 52 }
  0x29   : > { %3590 = dma.done.wait (%p4631_p8), [#allocation3], 4096  }
  0x2a   : > { %3592 = vsyncadd (%p4631_p8), [#allocation3], 4294963200  ;;  %s2827_s24 = sshll.u32 %s2820_s28, 4  ;;  %v3600_v0 = vmov 0   ;;  %v3295_v1 = vld [vmem:[%s4616_s1 + $0x4] ss:$16 sps:$4 sm:$0xff]  }
  0x2b   : > { %474 = vmatprep.mubr.bf16.mxu0 %v3600_v0  ;;  %p329_p2 = scmp.lt.s32.totalorder %s2827_s24, 31  ;;  %587 = vmatprep.mubr.bf16.mxu1 %v3600_v0  ;;  %v3297_v2 = vld [vmem:[%s4616_s1] ss:$16 sps:$4 sm:$0xff]   ;;  %vm417_vm0 = vcmask 130048   ;;  %v3298_v8 = vld [vmem:[%s4616_s1 + $0xc] ss:$16 sps:$4 sm:$0xff]  }
  0x2c   : > { %442 = vmatprep.subr.bf16.mxu0 %v3295_v1  ;;  %v3300_v9 = vld [vmem:[%s4616_s1 + $0x8] ss:$16 sps:$4 sm:$0xff]   ;;  %v3301_v10 = vld [vmem:[%s4618_s3] ss:$16 sps:$4 sm:$0xff]   ;;  %555 = vmatprep.subr.bf16.mxu1 %v3298_v8  ;;  %v3303_v11 = vld [vmem:[%s4618_s3 + $0x4] ss:$16 sps:$4 sm:$0xff]  }
  0x2d   : > { %s4635_s24 = smov (!%p329_p2, %s2827_s24), 31  ;;  %443 = vmatpush1.bf16.msra.mxu0 %v3297_v2  ;;  %556 = vmatpush1.bf16.msra.mxu1 %v3300_v9  ;;  %v3306_v13 = vld [vmem:[%s4618_s3 + $0xc] ss:$16 sps:$4 sm:$0xff]   ;;  %v3304_v14 = vld [vmem:[%s4618_s3 + $0x8] ss:$16 sps:$4 sm:$0xff]  }
  0x2e   : > { %s3699_s25 = sshll.u32 %s4635_s24, 3  ;;  %1554 = vmatprep.subr.bf16.mxu0 %v3303_v11  ;;  %v3309_v15 = vld [vmem:[%s4618_s3 + $0x24] ss:$16 sps:$4 sm:$0xff]   ;;  %1780 = vmatprep.subr.bf16.mxu1 %v3306_v13  ;;  %v3307_v16 = vld [vmem:[%s4618_s3 + $0x20] ss:$16 sps:$4 sm:$0xff]  }
  0x2f   : > { %s3705_s30 = scalar_lea.vmem %s4615_s0, %s3699_s25  ;;  %v3312_v18 = vld [vmem:[%s4618_s3 + $0x2c] ss:$16 sps:$4 sm:$0xff]   ;;  %v3315_v20 = vld [vmem:[%s4618_s3 + $0x44] ss:$16 sps:$4 sm:$0xff]   ;;  %v3310_v21 = vld [vmem:[%s4618_s3 + $0x28] ss:$16 sps:$4 sm:$0xff]   ;;  %s4556_s26 = scalar_lea.vmem %s4622_s7, %s3699_s25 }
  0x30   : > { %v347_v3 = vld [vmem:[%s3705_s30] sm:$0xff]  ;;  %v348_v4 = vld [vmem:[%s3705_s30 + $0x8] sm:$0xff]  ;;  %v349_v6 = vld [vmem:[%s3705_s30 + $0x10] sm:$0xff]  ;;  %s4563_s10 = scalar_lea.vmem %s4623_s8, %s3699_s25 }
  0x31   : > { %v363_v5 = vpack.c.bf16 %v348_v4, %v347_v3  ;;  %v350_v7 = vld [vmem:[%s3705_s30 + $0x18] sm:$0xff]  ;;  %v351_v17 = vld [vmem:[%s3705_s30 + $0x20] sm:$0xff]  ;;  %v352_v19 = vld [vmem:[%s3705_s30 + $0x28] sm:$0xff] }
  0x32   : > { %v364_v12 = vpack.c.bf16 %v350_v7, %v349_v6  ;;  %v3313_v22 = vld [vmem:[%s4618_s3 + $0x40] ss:$16 sps:$4 sm:$0xff]   ;;  %v3318_v23 = vld [vmem:[%s4618_s3 + $0x4c] ss:$16 sps:$4 sm:$0xff]   ;;  %v3321_v24 = vld [vmem:[%s4618_s3 + $0x64] ss:$16 sps:$4 sm:$0xff]   ;;  %v365_v25 = vpack.c.bf16 %v352_v19, %v351_v17 }
  0x33   : > { %2837 = vmatmul.mubr.msk.bf16.vlgmr.msra.gmra.mrb[0].mxu0 %vm417_vm0, %v363_v5  ;;  %2845 = vmatmul.mubr.msk.bf16.vlgmr.msra.gmra.mrb[0].mxu1 %vm417_vm0, %v363_v5  ;;  %v3316_v26 = vld [vmem:[%s4618_s3 + $0x48] ss:$16 sps:$4 sm:$0xff]   ;;  %v3319_v27 = vld [vmem:[%s4618_s3 + $0x60] ss:$16 sps:$4 sm:$0xff]   ;;  %v3324_v28 = vld [vmem:[%s4618_s3 + $0x6c] ss:$16 sps:$4 sm:$0xff]  }
  0x34   : > { %484 = vmatprep.mubr.bf16.mxu0 %v3600_v0  ;;  %1555 = vmatpush1.bf16.msra.mxu0 %v3301_v10  ;;  %v3327_v29 = vld [vmem:[%s4618_s3 + $0x84] ss:$16 sps:$4 sm:$0xff]   ;;  %v354_v31 = vld [vmem:[%s3705_s30 + $0x38] sm:$0xff]  ;;  %v3325_v33 = vld [vmem:[%s4618_s3 + $0x80] ss:$16 sps:$4 sm:$0xff]  }
  0x35   : > { %1556 = vmatprep.subr.bf16.mxu0 %v3309_v15  ;;  %597 = vmatprep.mubr.bf16.mxu1 %v3600_v0  ;;  %v353_v30 = vld [vmem:[%s3705_s30 + $0x30] sm:$0xff]  ;;  %v3322_v32 = vld [vmem:[%s4618_s3 + $0x68] ss:$16 sps:$4 sm:$0xff]   ;;  %v3330_v34 = vld [vmem:[%s4618_s3 + $0x8c] ss:$16 sps:$4 sm:$0xff]  }
  0x36   : > { %1781 = vmatpush1.bf16.msra.mxu1 %v3304_v14  ;;  %v3333_v35 = vld [vmem:[%s4618_s3 + $0xa4] ss:$16 sps:$4 sm:$0xff]   ;;  %v366_v36 = vpack.c.bf16 %v354_v31, %v353_v30  ;;  %v3328_v37 = vld [vmem:[%s4618_s3 + $0x88] ss:$16 sps:$4 sm:$0xff]   ;;  %v3331_v38 = vld [vmem:[%s4618_s3 + $0xa0] ss:$16 sps:$4 sm:$0xff]   ;;  %v377_v31 = vlaneseq }
  0x37   : > { %1782 = vmatprep.subr.bf16.mxu1 %v3312_v18  ;;  %v3336_v39 = vld [vmem:[%s4618_s3 + $0xac] ss:$16 sps:$4 sm:$0xff]   ;;  %v3339_v40 = vld [vmem:[%s4618_s3 + $0xc4] ss:$16 sps:$4 sm:$0xff]   ;;  %v3334_v43 = vld [vmem:[%s4618_s3 + $0xa8] ss:$16 sps:$4 sm:$0xff]  }
  0x38   : > { %1557 = vmatpush1.bf16.msra.mxu0 %v3307_v16  ;;  %v355_v41 = vld [vmem:[%s3705_s30 + $0x40] sm:$0xff]  ;;  %v356_v42 = vld [vmem:[%s3705_s30 + $0x48] sm:$0xff]  ;;  %v357_v52 = vld [vmem:[%s3705_s30 + $0x50] sm:$0xff] }
  0x39   : > { %1558 = vmatprep.subr.bf16.mxu0 %v3315_v20  ;;  %v3337_v44 = vld [vmem:[%s4618_s3 + $0xc0] ss:$16 sps:$4 sm:$0xff]   ;;  %v3342_v45 = vld [vmem:[%s4618_s3 + $0xcc] ss:$16 sps:$4 sm:$0xff]   ;;  %v3345_v46 = vld [vmem:[%s4618_s3 + $0xe4] ss:$16 sps:$4 sm:$0xff]   ;;  %v367_v47 = vpack.c.bf16 %v356_v42, %v355_v41 }
  0x3a   : > { %1783 = vmatpush1.bf16.msra.mxu1 %v3310_v21  ;;  %v3340_v48 = vld [vmem:[%s4618_s3 + $0xc8] ss:$16 sps:$4 sm:$0xff]   ;;  %v3343_v49 = vld [vmem:[%s4618_s3 + $0xe0] ss:$16 sps:$4 sm:$0xff]   ;;  %v3348_v50 = vld [vmem:[%s4618_s3 + $0xec] ss:$16 sps:$4 sm:$0xff]  }
  0x3b   : > { %2838 = vmatmul.mubr.msk.bf16.gmra.mrb[4].mxu0 %vm417_vm0, %v364_v12  ;;  %1784 = vmatprep.subr.bf16.mxu1 %v3318_v23  ;;  %v3351_v51 = vld [vmem:[%s4618_s3 + $0x104] ss:$16 sps:$4 sm:$0xff]   ;;  %v358_v53 = vld [vmem:[%s3705_s30 + $0x58] sm:$0xff]  ;;  %v3349_v55 = vld [vmem:[%s4618_s3 + $0x100] ss:$16 sps:$4 sm:$0xff]  }
  0x3c   : > { %494 = vmatprep.mubr.bf16.mxu0 %v3600_v0  ;;  %1559 = vmatpush1.bf16.msra.mxu0 %v3313_v22  ;;  %v3346_v54 = vld [vmem:[%s4618_s3 + $0xe8] ss:$16 sps:$4 sm:$0xff]   ;;  %v3354_v56 = vld [vmem:[%s4618_s3 + $0x10c] ss:$16 sps:$4 sm:$0xff]   ;;  %v3357_v57 = vld [vmem:[%s4618_s3 + $0x124] ss:$16 sps:$4 sm:$0xff]   ;;  %v368_v58 = vpack.c.bf16 %v358_v53, %v357_v52 }
  0x3d   : > { %2846 = vmatmul.mubr.msk.bf16.gmra.mrb[4].mxu1 %vm417_vm0, %v364_v12  ;;  %1560 = vmatprep.subr.bf16.mxu0 %v3321_v24  ;;  %v3352_v59 = vld [vmem:[%s4618_s3 + $0x108] ss:$16 sps:$4 sm:$0xff]   ;;  %v3355_v60 = vld [vmem:[%s4618_s3 + $0x120] ss:$16 sps:$4 sm:$0xff]   ;;  %v3360_v61 = vld [vmem:[%s4618_s3 + $0x12c] ss:$16 sps:$4 sm:$0xff]  }
  0x3e   : > { %607 = vmatprep.mubr.bf16.mxu1 %v3600_v0  ;;  %1785 = vmatpush1.bf16.msra.mxu1 %v3316_v26  ;;  %v359_v62 = vld [vmem:[%s3705_s30 + $0x60] sm:$0xff]  ;;  %v360_v63 = vld [vmem:[%s3705_s30 + $0x68] sm:$0xff]  ;;  %v361_v11 = vld [vmem:[%s3705_s30 + $0x70] sm:$0xff] }
  0x3f   : > { %1786 = vmatprep.subr.bf16.mxu1 %v3324_v28  ;;  %v3358_v1 = vld [vmem:[%s4618_s3 + $0x128] ss:$16 sps:$4 sm:$0xff]   ;;  %v3363_v2 = vld [vmem:[%s4618_s3 + $0x144] ss:$16 sps:$4 sm:$0xff]   ;;  %v3361_v3 = vld [vmem:[%s4618_s3 + $0x140] ss:$16 sps:$4 sm:$0xff]   ;;  %v369_v7 = vpack.c.bf16 %v360_v63, %v359_v62 }
  0x40   : > { %1561 = vmatpush1.bf16.msra.mxu0 %v3319_v27  ;;  %v3366_v4 = vld [vmem:[%s4618_s3 + $0x14c] ss:$16 sps:$4 sm:$0xff]   ;;  %v3369_v5 = vld [vmem:[%s4618_s3 + $0x164] ss:$16 sps:$4 sm:$0xff]   ;;  %v3364_v6 = vld [vmem:[%s4618_s3 + $0x148] ss:$16 sps:$4 sm:$0xff]  }
  0x41   : > { %1562 = vmatprep.subr.bf16.mxu0 %v3327_v29  ;;  %v3367_v8 = vld [vmem:[%s4618_s3 + $0x160] ss:$16 sps:$4 sm:$0xff]   ;;  %v3372_v9 = vld [vmem:[%s4618_s3 + $0x16c] ss:$16 sps:$4 sm:$0xff]   ;;  %v3375_v10 = vld [vmem:[%s4618_s3 + $0x184] ss:$16 sps:$4 sm:$0xff]  }
  0x42   : > { %1787 = vmatpush1.bf16.msra.mxu1 %v3322_v32  ;;  %v362_v12 = vld [vmem:[%s3705_s30 + $0x78] sm:$0xff]  ;;  %v3373_v14 = vld [vmem:[%s4618_s3 + $0x180] ss:$16 sps:$4 sm:$0xff]   ;;  %v3381_v16 = vld [vmem:[%s4618_s3 + $0x1a4] ss:$16 sps:$4 sm:$0xff]   ;;  %v3964_v32 = vshrl.u32 %v377_v31, 7 }
  0x43   : > { %2839 = vmatmul.mubr.msk.bf16.gmra.mrb[8].mxu0 %vm417_vm0, %v365_v25  ;;  %1788 = vmatprep.subr.bf16.mxu1 %v3330_v34  ;;  %v3370_v13 = vld [vmem:[%s4618_s3 + $0x168] ss:$16 sps:$4 sm:$0xff]   ;;  %v3378_v15 = vld [vmem:[%s4618_s3 + $0x18c] ss:$16 sps:$4 sm:$0xff]   ;;  %v370_v18 = vpack.c.bf16 %v362_v12, %v361_v11  ;;  %v3379_v19 = vld [vmem:[%s4618_s3 + $0x1a0] ss:$16 sps:$4 sm:$0xff]  }
  0x44   : > { %504 = vmatprep.mubr.bf16.mxu0 %v3600_v0  ;;  %1563 = vmatpush1.bf16.msra.mxu0 %v3325_v33  ;;  %v3376_v17 = vld [vmem:[%s4618_s3 + $0x188] ss:$16 sps:$4 sm:$0xff]   ;;  %v3384_v20 = vld [vmem:[%s4618_s3 + $0x1ac] ss:$16 sps:$4 sm:$0xff]   ;;  %v3387_v22 = vld [vmem:[%s4618_s3 + $0x1c4] ss:$16 sps:$4 sm:$0xff]  }
  0x45   : > { %2847 = vmatmul.mubr.msk.bf16.gmra.mrb[8].mxu1 %vm417_vm0, %v365_v25  ;;  %1564 = vmatprep.subr.bf16.mxu0 %v3333_v35  ;;  %v3382_v21 = vld [vmem:[%s4618_s3 + $0x1a8] ss:$16 sps:$4 sm:$0xff]   ;;  %v3390_v23 = vld [vmem:[%s4618_s3 + $0x1cc] ss:$16 sps:$4 sm:$0xff]   ;;  %v3385_v24 = vld [vmem:[%s4618_s3 + $0x1c0] ss:$16 sps:$4 sm:$0xff]  }
  0x46   : > { %617 = vmatprep.mubr.bf16.mxu1 %v3600_v0  ;;  %1789 = vmatpush1.bf16.msra.mxu1 %v3328_v37  ;;  %v3393_v25 = vld [vmem:[%s4618_s3 + $0x1e4] ss:$16 sps:$4 sm:$0xff]   ;;  %v3396_v26 = vld [vmem:[%s4618_s3 + $0x1ec] ss:$16 sps:$4 sm:$0xff]   ;;  %v3391_v27 = vld [vmem:[%s4618_s3 + $0x1e0] ss:$16 sps:$4 sm:$0xff]  }
  0x47   : > { %1790 = vmatprep.subr.bf16.mxu1 %v3336_v39  ;;  %v3394_v28 = vld [vmem:[%s4618_s3 + $0x1e8] ss:$16 sps:$4 sm:$0xff]   ;;  %v3399_v29 = vld [vmem:[%s4618_s3 + $0x204] ss:$16 sps:$4 sm:$0xff]   ;;  %v3402_v30 = vld [vmem:[%s4618_s3 + $0x20c] ss:$16 sps:$4 sm:$0xff]  }
  0x48   : > { %1565 = vmatpush1.bf16.msra.mxu0 %v3331_v38  ;;  %v379_v33 = vsub.s32 0, %v3964_v32  ;;  %v375_v34 = vld [vmem:[%s4617_s2] sm:$0xf]  ;;  %v383_v35 = vsub.s32 1, %v3964_v32  ;;  %v387_v39 = vsub.s32 2, %v3964_v32  ;;  %v391_v42 = vsub.s32 3, %v3964_v32 }
  0x49   : > { %1566 = vmatprep.subr.bf16.mxu0 %v3339_v40  ;;  %v3403_v12 = vld [vmem:[%s4618_s3 + $0x220] ss:$16 sps:$4 sm:$0xff]   ;;  %s3601_s30 = smov 64  }
  0x4a   : > { %1791 = vmatpush1.bf16.msra.mxu1 %v3334_v43  ;;  %v3977_v37 = vrot.slane %v375_v34, %v383_v35 }
  0x4b   : > { %2840 = vmatmul.mubr.msk.bf16.gmra.mrb[12].mxu0 %vm417_vm0, %v366_v36  ;;  %1792 = vmatprep.subr.bf16.mxu1 %v3342_v45 }
  0x4c   : > { %514 = vmatprep.mubr.bf16.mxu0 %v3600_v0  ;;  %1567 = vmatpush1.bf16.msra.mxu0 %v3337_v44 }
  0x4d   : > { %2848 = vmatmul.mubr.msk.bf16.gmra.mrb[12].mxu1 %vm417_vm0, %v366_v36  ;;  %1568 = vmatprep.subr.bf16.mxu0 %v3345_v46  ;;  %v3973_v36 = vrot.slane %v375_v34, %v379_v33 }
  0x4e   : > { %627 = vmatprep.mubr.bf16.mxu1 %v3600_v0  ;;  %1793 = vmatpush1.bf16.msra.mxu1 %v3340_v48  ;;  %v3987_v48 = vrot.slane %v375_v34, %v387_v39 }
  0x4f   : > { %1794 = vmatprep.subr.bf16.mxu1 %v3348_v50 }
  0x50   : > { %1569 = vmatpush1.bf16.msra.mxu0 %v3343_v49 }
  0x51   : > { %1570 = vmatprep.subr.bf16.mxu0 %v3351_v51  ;;  %v3991_v51 = vrot.slane %v375_v34, %v391_v42  ;;  %v3412_v34 = vld [vmem:[%s4618_s3 + $0x248] ss:$16 sps:$4 sm:$0xff]  }
  0x52   : > { %1795 = vmatpush1.bf16.msra.mxu1 %v3346_v54 }
  0x53   : > { %2841 = vmatmul.mubr.msk.bf16.gmra.mrb[16].mxu0 %vm417_vm0, %v367_v47  ;;  %1796 = vmatprep.subr.bf16.mxu1 %v3354_v56 }
  0x54   : > { %524 = vmatprep.mubr.bf16.mxu0 %v3600_v0  ;;  %1571 = vmatpush1.bf16.msra.mxu0 %v3349_v55 }
  0x55   : > { %2849 = vmatmul.mubr.msk.bf16.gmra.mrb[16].mxu1 %vm417_vm0, %v367_v47  ;;  %1572 = vmatprep.subr.bf16.mxu0 %v3357_v57 }
  0x56   : > { %637 = vmatprep.mubr.bf16.mxu1 %v3600_v0  ;;  %1797 = vmatpush1.bf16.msra.mxu1 %v3352_v59  ;;  %v3400_v59 = vld [vmem:[%s4618_s3 + $0x208] ss:$16 sps:$4 sm:$0xff]  }
  0x57   : > { %1798 = vmatprep.subr.bf16.mxu1 %v3360_v61 }
  0x58   : > { %1573 = vmatpush1.bf16.msra.mxu0 %v3355_v60 }
  0x59   : > { %1574 = vmatprep.subr.bf16.mxu0 %v3363_v2  ;;  %v3408_v2 = vld [vmem:[%s4618_s3 + $0x22c] ss:$16 sps:$4 sm:$0xff]  }
  0x5a   : > { %1799 = vmatpush1.bf16.msra.mxu1 %v3358_v1  ;;  %v3405_v1 = vld [vmem:[%s4618_s3 + $0x224] ss:$16 sps:$4 sm:$0xff]  }
  0x5b   : > { %2842 = vmatmul.mubr.msk.bf16.gmra.mrb[20].mxu0 %vm417_vm0, %v368_v58  ;;  %1800 = vmatprep.subr.bf16.mxu1 %v3366_v4 }
  0x5c   : > { %534 = vmatprep.mubr.bf16.mxu0 %v3600_v0  ;;  %1575 = vmatpush1.bf16.msra.mxu0 %v3361_v3 }
  0x5d   : > { %2850 = vmatmul.mubr.msk.bf16.gmra.mrb[20].mxu1 %vm417_vm0, %v368_v58  ;;  %1576 = vmatprep.subr.bf16.mxu0 %v3369_v5  ;;  %v3397_v58 = vld [vmem:[%s4618_s3 + $0x200] ss:$16 sps:$4 sm:$0xff]  }
  0x5e   : > { %647 = vmatprep.mubr.bf16.mxu1 %v3600_v0  ;;  %1801 = vmatpush1.bf16.msra.mxu1 %v3364_v6 }
  0x5f   : > { %1802 = vmatprep.subr.bf16.mxu1 %v3372_v9 }
  0x60   : > { %1577 = vmatpush1.bf16.msra.mxu0 %v3367_v8 }
  0x61   : > { %1578 = vmatprep.subr.bf16.mxu0 %v3375_v10 }
  0x62   : > { %1803 = vmatpush1.bf16.msra.mxu1 %v3370_v13 }
  0x63   : > { %2843 = vmatmul.mubr.msk.bf16.gmra.mrb[24].mxu0 %vm417_vm0, %v369_v7  ;;  %1804 = vmatprep.subr.bf16.mxu1 %v3378_v15 }
  0x64   : > { %544 = vmatprep.mubr.bf16.mxu0 %v3600_v0  ;;  %1579 = vmatpush1.bf16.msra.mxu0 %v3373_v14 }
  0x65   : > { %2851 = vmatmul.mubr.msk.bf16.gmra.mrb[24].mxu1 %vm417_vm0, %v369_v7  ;;  %1580 = vmatprep.subr.bf16.mxu0 %v3381_v16  ;;  %v3406_v16 = vld [vmem:[%s4618_s3 + $0x228] ss:$16 sps:$4 sm:$0xff]  }
  0x66   : > { %657 = vmatprep.mubr.bf16.mxu1 %v3600_v0  ;;  %1805 = vmatpush1.bf16.msra.mxu1 %v3376_v17  ;;  %v3388_v0 = vld [vmem:[%s4618_s3 + $0x1c8] ss:$16 sps:$4 sm:$0xff]   ;;  %v3411_v17 = vld [vmem:[%s4618_s3 + $0x244] ss:$16 sps:$4 sm:$0xff]  }
  0x67   : > { %1806 = vmatprep.subr.bf16.mxu1 %v3384_v20 }
  0x68   : > { %1581 = vmatpush1.bf16.msra.mxu0 %v3379_v19 }
  0x69   : > { %1582 = vmatprep.subr.bf16.mxu0 %v3387_v22 }
  0x6a   : > { %1807 = vmatpush1.bf16.msra.mxu1 %v3382_v21  ;;  %v3414_v21 = vld [vmem:[%s4618_s3 + $0x24c] ss:$16 sps:$4 sm:$0xff]  }
  0x6b   : > { %2844 = vmatmul.mubr.msk.bf16.gmra.mrb[28].mxu0 %vm417_vm0, %v370_v18  ;;  %1808 = vmatprep.subr.bf16.mxu1 %v3390_v23 }
  0x6c   : > { %1583 = vmatpush1.bf16.msra.mxu0 %v3385_v24 }
  0x6d   : > { %2852 = vmatmul.mubr.msk.bf16.gmra.mrb[28].mxu1 %vm417_vm0, %v370_v18  ;;  %1584 = vmatprep.subr.bf16.mxu0 %v3393_v25 }
  0x6e   : > { %1809 = vmatpush1.bf16.msra.mxu1 %v3388_v0 }
  0x6f   : > { %1810 = vmatprep.subr.bf16.mxu1 %v3396_v26 }
  0x70   : > { %1585 = vmatpush1.bf16.msra.mxu0 %v3391_v27 }
  0x71   : > { %1667 = vmatprep.subr.bf16.mxu0 %v3399_v29 }
  0x72   : > { %1811 = vmatpush1.bf16.msra.mxu1 %v3394_v28 }
  0x73   : > { %1893 = vmatprep.subr.bf16.mxu1 %v3402_v30  ;;  %v3409_v30 = vld [vmem:[%s4618_s3 + $0x240] ss:$16 sps:$4 sm:$0xff]  }
 0x106   : > { %v476_v38 = vpop.f32.mrb[0].mxu0  ;;  %v589_v55 = vpop.f32.mrb[0].mxu1 }
 0x107   : > { %v477_v40 = vadd.f32 %v476_v38, %v3973_v36  ;;  %v478_v41 = vpop.f32.mrb[1].mxu0  ;;  %v590_v60 = vadd.f32 %v589_v55, %v3987_v48  ;;  %v591_v61 = vpop.f32.mrb[1].mxu1 }
 0x108   : > { %v479_v43 = vadd.f32 %v478_v41, %v3977_v37  ;;  %v480_v44 = vpop.f32.mrb[2].mxu0  ;;  %v592_v3 = vadd.f32 %v591_v61, %v3991_v51  ;;  %v593_v4 = vpop.f32.mrb[2].mxu1  ;;  %v3418_v61 = vld [vmem:[%s4618_s3 + $0x268] ss:$16 sps:$4 sm:$0xff]  }
 0x109   : > { %v481_v45 = vadd.f32 %v480_v44, %v3973_v36  ;;  %v482_v46 = vpop.f32.mrb[3].mxu0  ;;  %v668_v49 = vmax.f32 %v477_v40, 0.0  ;;  %v670_v7 = vmax.f32 %v590_v60, 0.0  ;;  %v594_v8 = vadd.f32 %v593_v4, %v3987_v48  ;;  %v595_v9 = vpop.f32.mrb[3].mxu1  ;;  %v3417_v44 = vld [vmem:[%s4618_s3 + $0x264] ss:$16 sps:$4 sm:$0xff]  }
 0x10a   : > { %v483_v47 = vadd.f32 %v482_v46, %v3977_v37  ;;  %v669_v52 = vmax.f32 %v479_v43, 0.0  ;;  %v671_v13 = vmax.f32 %v592_v3, 0.0  ;;  %v596_v14 = vadd.f32 %v595_v9, %v3991_v51  ;;  %v3426_v3 = vld [vmem:[%s4618_s3 + $0x28c] ss:$16 sps:$4 sm:$0xff]  }
 0x10b   : > { %v672_v50 = vmax.f32 %v481_v45, 0.0  ;;  %v674_v18 = vmax.f32 %v594_v8, 0.0  ;;  %v3420_v45 = vld [vmem:[%s4618_s3 + $0x26c] ss:$16 sps:$4 sm:$0xff]  }
 0x10c   : > { %v673_v53 = vmax.f32 %v483_v47, 0.0  ;;  %v675_v22 = vmax.f32 %v596_v14, 0.0  ;;  %v3424_v14 = vld [vmem:[%s4618_s3 + $0x288] ss:$16 sps:$4 sm:$0xff]  }
 0x10d   : > { %v732_v54 = vpack.c.bf16 %v672_v50, %v668_v49  ;;  %v4025_v0 = vpack.c.bf16 %v674_v18, %v670_v7 }
 0x10e   : > { %v733_v56 = vpack.c.bf16 %v673_v53, %v669_v52  ;;  %v486_v57 = vpop.f32.mrb[4].mxu0  ;;  %v4027_v26 = vpack.c.bf16 %v675_v22, %v671_v13  ;;  %v3421_v13 = vld [vmem:[%s4618_s3 + $0x280] ss:$16 sps:$4 sm:$0xff]  }
 0x10f   : > { %v487_v62 = vadd.f32 %v486_v57, %v3973_v36  ;;  %v488_v63 = vpop.f32.mrb[5].mxu0  ;;  %v3415_v57 = vld [vmem:[%s4618_s3 + $0x260] ss:$16 sps:$4 sm:$0xff]  }
 0x110   : > { %v489_v5 = vadd.f32 %v488_v63, %v3977_v37  ;;  %v490_v6 = vpop.f32.mrb[6].mxu0  ;;  %1586 = vmatprep.mubr.bf16.mxu0 %v733_v56  ;;  %1812 = vmatprep.mubr.bf16.mxu1 %v733_v56  ;;  %v599_v27 = vpop.f32.mrb[4].mxu1 }
 0x111   : > { %v491_v10 = vadd.f32 %v490_v6, %v3973_v36  ;;  %v492_v11 = vpop.f32.mrb[7].mxu0  ;;  %1587 = vmatmul.mubr.bf16.vlgmr.msra.gmra.mrb[32].mxu0 %v732_v54  ;;  %1813 = vmatmul.mubr.bf16.vlgmr.msra.gmra.mrb[32].mxu1 %v732_v54  ;;  %v676_v19 = vmax.f32 %v487_v62, 0.0  ;;  %v600_v38 = vadd.f32 %v599_v27, %v3987_v48  ;;  %v601_v40 = vpop.f32.mrb[5].mxu1  ;;  %v3423_v62 = vld [vmem:[%s4618_s3 + $0x284] ss:$16 sps:$4 sm:$0xff]  }
 0x112   : > { %v493_v15 = vadd.f32 %v492_v11, %v3977_v37  ;;  %1668 = vmatpush1.bf16.msra.mxu0 %v3397_v58  ;;  %1894 = vmatpush1.bf16.msra.mxu1 %v3400_v59  ;;  %v677_v23 = vmax.f32 %v489_v5, 0.0  ;;  %v602_v46 = vadd.f32 %v601_v40, %v3991_v51  ;;  %v603_v47 = vpop.f32.mrb[6].mxu1 }
 0x113   : > { %v680_v20 = vmax.f32 %v491_v10, 0.0  ;;  %1669 = vmatprep.subr.bf16.mxu0 %v3405_v1  ;;  %1895 = vmatprep.subr.bf16.mxu1 %v3408_v2  ;;  %v678_v52 = vmax.f32 %v600_v38, 0.0  ;;  %v604_v53 = vadd.f32 %v603_v47, %v3987_v48  ;;  %v605_v54 = vpop.f32.mrb[7].mxu1 }
 0x114   : > { %v681_v24 = vmax.f32 %v493_v15, 0.0  ;;  %v679_v58 = vmax.f32 %v602_v46, 0.0  ;;  %v606_v59 = vadd.f32 %v605_v54, %v3991_v51 }
 0x115   : > { %v736_v25 = vpack.c.bf16 %v680_v20, %v676_v19  ;;  %v682_v63 = vmax.f32 %v604_v53, 0.0  ;;  %v3429_v19 = vld [vmem:[%s4618_s3 + $0x2a4] ss:$16 sps:$4 sm:$0xff]   ;;  %v3432_v20 = vld [vmem:[%s4618_s3 + $0x2ac] ss:$16 sps:$4 sm:$0xff]  }
 0x116   : > { %v737_v28 = vpack.c.bf16 %v681_v24, %v677_v23  ;;  %1670 = vmatpush1.bf16.msra.mxu0 %v3403_v12  ;;  %v496_v29 = vpop.f32.mrb[8].mxu0  ;;  %1896 = vmatpush1.bf16.msra.mxu1 %v3406_v16  ;;  %v683_v4 = vmax.f32 %v606_v59, 0.0 }
 0x117   : > { %v497_v41 = vadd.f32 %v496_v29, %v3973_v36  ;;  %v498_v43 = vpop.f32.mrb[9].mxu0  ;;  %1671 = vmatprep.subr.bf16.mxu0 %v3411_v17  ;;  %1897 = vmatprep.subr.bf16.mxu1 %v3414_v21  ;;  %v4061_v7 = vpack.c.bf16 %v682_v63, %v678_v52 }
 0x118   : > { %v499_v49 = vadd.f32 %v498_v43, %v3977_v37  ;;  %v500_v50 = vpop.f32.mrb[10].mxu0  ;;  %1596 = vmatprep.mubr.bf16.mxu0 %v737_v28  ;;  %1822 = vmatprep.mubr.bf16.mxu1 %v737_v28  ;;  %v4063_v9 = vpack.c.bf16 %v683_v4, %v679_v58  ;;  %v609_v10 = vpop.f32.mrb[8].mxu1  ;;  %v3430_v43 = vld [vmem:[%s4618_s3 + $0x2a8] ss:$16 sps:$4 sm:$0xff]   ;;  %v3444_v4 = vld [vmem:[%s4618_s3 + $0x2ec] ss:$16 sps:$4 sm:$0xff]  }
 0x119   : > { %v501_v55 = vadd.f32 %v500_v50, %v3973_v36  ;;  %v502_v56 = vpop.f32.mrb[11].mxu0  ;;  %1597 = vmatmul.mubr.bf16.gmra.mrb[36].mxu0 %v736_v25  ;;  %1823 = vmatmul.mubr.bf16.gmra.mrb[36].mxu1 %v736_v25  ;;  %v684_v1 = vmax.f32 %v497_v41, 0.0  ;;  %v610_v15 = vadd.f32 %v609_v10, %v3987_v48  ;;  %v611_v16 = vpop.f32.mrb[9].mxu1 }
 0x11a   : > { %v503_v60 = vadd.f32 %v502_v56, %v3977_v37  ;;  %1672 = vmatpush1.bf16.msra.mxu0 %v3409_v30  ;;  %1898 = vmatpush1.bf16.msra.mxu1 %v3412_v34  ;;  %v685_v5 = vmax.f32 %v499_v49, 0.0  ;;  %v612_v21 = vadd.f32 %v611_v16, %v3991_v51  ;;  %v613_v22 = vpop.f32.mrb[10].mxu1  ;;  %v3427_v34 = vld [vmem:[%s4618_s3 + $0x2a0] ss:$16 sps:$4 sm:$0xff]   ;;  %v3438_v49 = vld [vmem:[%s4618_s3 + $0x2cc] ss:$16 sps:$4 sm:$0xff]  }
 0x11b   : > { %v688_v2 = vmax.f32 %v501_v55, 0.0  ;;  %1673 = vmatprep.subr.bf16.mxu0 %v3417_v44  ;;  %1899 = vmatprep.subr.bf16.mxu1 %v3420_v45  ;;  %v686_v25 = vmax.f32 %v610_v15, 0.0  ;;  %v614_v27 = vadd.f32 %v613_v22, %v3987_v48  ;;  %v615_v28 = vpop.f32.mrb[11].mxu1  ;;  %v3435_v44 = vld [vmem:[%s4618_s3 + $0x2c4] ss:$16 sps:$4 sm:$0xff]  }
 0x11c   : > { %v689_v6 = vmax.f32 %v503_v60, 0.0  ;;  %v687_v38 = vmax.f32 %v612_v21, 0.0  ;;  %v616_v40 = vadd.f32 %v615_v28, %v3991_v51  ;;  %v3433_v60 = vld [vmem:[%s4618_s3 + $0x2c0] ss:$16 sps:$4 sm:$0xff]   ;;  %v3447_v21 = vld [vmem:[%s4618_s3 + $0x304] ss:$16 sps:$4 sm:$0xff]  }
 0x11d   : > { %v740_v8 = vpack.c.bf16 %v688_v2, %v684_v1  ;;  %v690_v45 = vmax.f32 %v614_v27, 0.0  ;;  %v3439_v16 = vld [vmem:[%s4618_s3 + $0x2e0] ss:$16 sps:$4 sm:$0xff]  }
 0x11e   : > { %v741_v11 = vpack.c.bf16 %v689_v6, %v685_v5  ;;  %1674 = vmatpush1.bf16.msra.mxu0 %v3415_v57  ;;  %v506_v12 = vpop.f32.mrb[12].mxu0  ;;  %1900 = vmatpush1.bf16.msra.mxu1 %v3418_v61  ;;  %v691_v50 = vmax.f32 %v616_v40, 0.0  ;;  %v3436_v61 = vld [vmem:[%s4618_s3 + $0x2c8] ss:$16 sps:$4 sm:$0xff]  }
 0x11f   : > { %v507_v17 = vadd.f32 %v506_v12, %v3973_v36  ;;  %v508_v18 = vpop.f32.mrb[13].mxu0  ;;  %1675 = vmatprep.subr.bf16.mxu0 %v3423_v62  ;;  %1901 = vmatprep.subr.bf16.mxu1 %v3426_v3  ;;  %v4097_v54 = vpack.c.bf16 %v690_v45, %v686_v25  ;;  %v3441_v3 = vld [vmem:[%s4618_s3 + $0x2e4] ss:$16 sps:$4 sm:$0xff]   ;;  %v3450_v25 = vld [vmem:[%s4618_s3 + $0x30c] ss:$16 sps:$4 sm:$0xff]  }
 0x120   : > { %v509_v23 = vadd.f32 %v508_v18, %v3977_v37  ;;  %v510_v24 = vpop.f32.mrb[14].mxu0  ;;  %1606 = vmatprep.mubr.bf16.mxu0 %v741_v11  ;;  %1832 = vmatprep.mubr.bf16.mxu1 %v741_v11  ;;  %v4099_v56 = vpack.c.bf16 %v691_v50, %v687_v38  ;;  %v619_v57 = vpop.f32.mrb[12].mxu1  ;;  %v3448_v45 = vld [vmem:[%s4618_s3 + $0x308] ss:$16 sps:$4 sm:$0xff]  }
 0x121   : > { %v511_v29 = vadd.f32 %v510_v24, %v3973_v36  ;;  %v512_v30 = vpop.f32.mrb[15].mxu0  ;;  %1607 = vmatmul.mubr.bf16.gmra.mrb[40].mxu0 %v740_v8  ;;  %1833 = vmatmul.mubr.bf16.gmra.mrb[40].mxu1 %v740_v8  ;;  %v692_v46 = vmax.f32 %v507_v17, 0.0  ;;  %v620_v62 = vadd.f32 %v619_v57, %v3987_v48  ;;  %v621_v63 = vpop.f32.mrb[13].mxu1 }
 0x122   : > { %v513_v41 = vadd.f32 %v512_v30, %v3977_v37  ;;  %1676 = vmatpush1.bf16.msra.mxu0 %v3421_v13  ;;  %1902 = vmatpush1.bf16.msra.mxu1 %v3424_v14  ;;  %v693_v52 = vmax.f32 %v509_v23, 0.0  ;;  %v622_v5 = vadd.f32 %v621_v63, %v3991_v51  ;;  %v623_v6 = vpop.f32.mrb[14].mxu1 }
 0x123   : > { %v696_v47 = vmax.f32 %v511_v29, 0.0  ;;  %1677 = vmatprep.subr.bf16.mxu0 %v3429_v19  ;;  %1903 = vmatprep.subr.bf16.mxu1 %v3432_v20  ;;  %v694_v11 = vmax.f32 %v620_v62, 0.0  ;;  %v624_v12 = vadd.f32 %v623_v6, %v3987_v48  ;;  %v625_v13 = vpop.f32.mrb[15].mxu1  ;;  %v3442_v20 = vld [vmem:[%s4618_s3 + $0x2e8] ss:$16 sps:$4 sm:$0xff]  }
 0x124   : > { %v697_v53 = vmax.f32 %v513_v41, 0.0  ;;  %v695_v17 = vmax.f32 %v622_v5, 0.0  ;;  %v626_v18 = vadd.f32 %v625_v13, %v3991_v51  ;;  %v3454_v6 = vld [vmem:[%s4618_s3 + $0x328] ss:$16 sps:$4 sm:$0xff]   ;;  %v3462_v13 = vld [vmem:[%s4618_s3 + $0x34c] ss:$16 sps:$4 sm:$0xff]  }
 0x125   : > { %v744_v55 = vpack.c.bf16 %v696_v47, %v692_v46  ;;  %v698_v22 = vmax.f32 %v624_v12, 0.0 }
 0x126   : > { %v745_v58 = vpack.c.bf16 %v697_v53, %v693_v52  ;;  %1678 = vmatpush1.bf16.msra.mxu0 %v3427_v34  ;;  %v516_v59 = vpop.f32.mrb[16].mxu0  ;;  %1904 = vmatpush1.bf16.msra.mxu1 %v3430_v43  ;;  %v699_v27 = vmax.f32 %v626_v18, 0.0  ;;  %v3453_v52 = vld [vmem:[%s4618_s3 + $0x324] ss:$16 sps:$4 sm:$0xff]   ;;  %v3456_v53 = vld [vmem:[%s4618_s3 + $0x32c] ss:$16 sps:$4 sm:$0xff]  }
 0x127   : > { %v517_v1 = vadd.f32 %v516_v59, %v3973_v36  ;;  %v518_v2 = vpop.f32.mrb[17].mxu0  ;;  %1679 = vmatprep.subr.bf16.mxu0 %v3435_v44  ;;  %1905 = vmatprep.subr.bf16.mxu1 %v3438_v49  ;;  %v4133_v30 = vpack.c.bf16 %v698_v22, %v694_v11  ;;  %v3445_v44 = vld [vmem:[%s4618_s3 + $0x300] ss:$16 sps:$4 sm:$0xff]  }
 0x128   : > { %v519_v8 = vadd.f32 %v518_v2, %v3977_v37  ;;  %v520_v10 = vpop.f32.mrb[18].mxu0  ;;  %1616 = vmatprep.mubr.bf16.mxu0 %v745_v58  ;;  %1842 = vmatprep.mubr.bf16.mxu1 %v745_v58  ;;  %v4135_v38 = vpack.c.bf16 %v699_v27, %v695_v17  ;;  %v629_v40 = vpop.f32.mrb[16].mxu1  ;;  %v3451_v2 = vld [vmem:[%s4618_s3 + $0x320] ss:$16 sps:$4 sm:$0xff]  }
 0x129   : > { %v521_v14 = vadd.f32 %v520_v10, %v3973_v36  ;;  %v522_v15 = vpop.f32.mrb[19].mxu0  ;;  %1617 = vmatmul.mubr.bf16.gmra.mrb[44].mxu0 %v744_v55  ;;  %1843 = vmatmul.mubr.bf16.gmra.mrb[44].mxu1 %v744_v55  ;;  %v700_v23 = vmax.f32 %v517_v1, 0.0  ;;  %v630_v46 = vadd.f32 %v629_v40, %v3987_v48  ;;  %v631_v47 = vpop.f32.mrb[17].mxu1  ;;  %v3468_v40 = vld [vmem:[%s4618_s3 + $0x36c] ss:$16 sps:$4 sm:$0xff]  }
 0x12a   : > { %v523_v19 = vadd.f32 %v522_v15, %v3977_v37  ;;  %1680 = vmatpush1.bf16.msra.mxu0 %v3433_v60  ;;  %1906 = vmatpush1.bf16.msra.mxu1 %v3436_v61  ;;  %v701_v28 = vmax.f32 %v519_v8, 0.0  ;;  %v632_v55 = vadd.f32 %v631_v47, %v3991_v51  ;;  %v633_v57 = vpop.f32.mrb[18].mxu1  ;;  %v3459_v8 = vld [vmem:[%s4618_s3 + $0x344] ss:$16 sps:$4 sm:$0xff]  }
 0x12b   : > { %v704_v24 = vmax.f32 %v521_v14, 0.0  ;;  %1681 = vmatprep.subr.bf16.mxu0 %v3441_v3  ;;  %1907 = vmatprep.subr.bf16.mxu1 %v3444_v4  ;;  %v702_v60 = vmax.f32 %v630_v46, 0.0  ;;  %v634_v61 = vadd.f32 %v633_v57, %v3987_v48  ;;  %v635_v62 = vpop.f32.mrb[19].mxu1 }
 0x12c   : > { %v705_v29 = vmax.f32 %v523_v19, 0.0  ;;  %v703_v3 = vmax.f32 %v632_v55, 0.0  ;;  %v636_v4 = vadd.f32 %v635_v62, %v3991_v51 }
 0x12d   : > { %v748_v34 = vpack.c.bf16 %v704_v24, %v700_v23  ;;  %v706_v10 = vmax.f32 %v634_v61, 0.0  ;;  %v3457_v23 = vld [vmem:[%s4618_s3 + $0x340] ss:$16 sps:$4 sm:$0xff]   ;;  %v3460_v24 = vld [vmem:[%s4618_s3 + $0x348] ss:$16 sps:$4 sm:$0xff]  }
 0x12e   : > { %v749_v41 = vpack.c.bf16 %v705_v29, %v701_v28  ;;  %1682 = vmatpush1.bf16.msra.mxu0 %v3439_v16  ;;  %v526_v43 = vpop.f32.mrb[20].mxu0  ;;  %1908 = vmatpush1.bf16.msra.mxu1 %v3442_v20  ;;  %v707_v14 = vmax.f32 %v636_v4, 0.0 }
 0x12f   : > { %v527_v49 = vadd.f32 %v526_v43, %v3973_v36  ;;  %v528_v50 = vpop.f32.mrb[21].mxu0  ;;  %1683 = vmatprep.subr.bf16.mxu0 %v3447_v21  ;;  %1909 = vmatprep.subr.bf16.mxu1 %v3450_v25  ;;  %v4169_v17 = vpack.c.bf16 %v706_v10, %v702_v60  ;;  %v3471_v60 = vld [vmem:[%s4618_s3 + $0x384] ss:$16 sps:$4 sm:$0xff]  }
 0x130   : > { %v529_v58 = vadd.f32 %v528_v50, %v3977_v37  ;;  %v530_v59 = vpop.f32.mrb[22].mxu0  ;;  %1626 = vmatprep.mubr.bf16.mxu0 %v749_v41  ;;  %1852 = vmatprep.mubr.bf16.mxu1 %v749_v41  ;;  %v4171_v19 = vpack.c.bf16 %v707_v14, %v703_v3  ;;  %v639_v20 = vpop.f32.mrb[20].mxu1  ;;  %v3472_v14 = vld [vmem:[%s4618_s3 + $0x388] ss:$16 sps:$4 sm:$0xff]  }
 0x131   : > { %v531_v63 = vadd.f32 %v530_v59, %v3973_v36  ;;  %v532_v1 = vpop.f32.mrb[23].mxu0  ;;  %1627 = vmatmul.mubr.bf16.gmra.mrb[48].mxu0 %v748_v34  ;;  %1853 = vmatmul.mubr.bf16.gmra.mrb[48].mxu1 %v748_v34  ;;  %v708_v11 = vmax.f32 %v527_v49, 0.0  ;;  %v640_v25 = vadd.f32 %v639_v20, %v3987_v48  ;;  %v641_v27 = vpop.f32.mrb[21].mxu1  ;;  %v3465_v34 = vld [vmem:[%s4618_s3 + $0x364] ss:$16 sps:$4 sm:$0xff]  }
 0x132   : > { %v533_v5 = vadd.f32 %v532_v1, %v3977_v37  ;;  %1684 = vmatpush1.bf16.msra.mxu0 %v3445_v44  ;;  %1910 = vmatpush1.bf16.msra.mxu1 %v3448_v45  ;;  %v709_v15 = vmax.f32 %v529_v58, 0.0  ;;  %v642_v41 = vadd.f32 %v641_v27, %v3991_v51  ;;  %v643_v43 = vpop.f32.mrb[22].mxu1  ;;  %v3466_v59 = vld [vmem:[%s4618_s3 + $0x368] ss:$16 sps:$4 sm:$0xff]   ;;  %v3474_v1 = vld [vmem:[%s4618_s3 + $0x38c] ss:$16 sps:$4 sm:$0xff]  }
 0x133   : > { %v712_v12 = vmax.f32 %v531_v63, 0.0  ;;  %1685 = vmatprep.subr.bf16.mxu0 %v3453_v52  ;;  %1911 = vmatprep.subr.bf16.mxu1 %v3456_v53  ;;  %v710_v46 = vmax.f32 %v640_v25, 0.0  ;;  %v644_v47 = vadd.f32 %v643_v43, %v3987_v48  ;;  %v645_v49 = vpop.f32.mrb[23].mxu1  ;;  %v3463_v53 = vld [vmem:[%s4618_s3 + $0x360] ss:$16 sps:$4 sm:$0xff]  }
 0x134   : > { %v713_v16 = vmax.f32 %v533_v5, 0.0  ;;  %v711_v55 = vmax.f32 %v642_v41, 0.0  ;;  %v646_v57 = vadd.f32 %v645_v49, %v3991_v51  ;;  %v3475_v43 = vld [vmem:[%s4618_s3 + $0x3a0] ss:$16 sps:$4 sm:$0xff]  }
 0x135   : > { %v752_v18 = vpack.c.bf16 %v712_v12, %v708_v11  ;;  %v714_v61 = vmax.f32 %v644_v47, 0.0  ;;  %v3478_v47 = vld [vmem:[%s4618_s3 + $0x3a8] ss:$16 sps:$4 sm:$0xff]  }
 0x136   : > { %v753_v21 = vpack.c.bf16 %v713_v16, %v709_v15  ;;  %1686 = vmatpush1.bf16.msra.mxu0 %v3451_v2  ;;  %v536_v22 = vpop.f32.mrb[24].mxu0  ;;  %1912 = vmatpush1.bf16.msra.mxu1 %v3454_v6  ;;  %v715_v2 = vmax.f32 %v646_v57, 0.0 }
 0x137   : > { %v537_v28 = vadd.f32 %v536_v22, %v3973_v36  ;;  %v538_v29 = vpop.f32.mrb[25].mxu0  ;;  %1687 = vmatprep.subr.bf16.mxu0 %v3459_v8  ;;  %1913 = vmatprep.subr.bf16.mxu1 %v3462_v13  ;;  %v4205_v5 = vpack.c.bf16 %v714_v61, %v710_v46  ;;  %v3469_v13 = vld [vmem:[%s4618_s3 + $0x380] ss:$16 sps:$4 sm:$0xff]   ;;  %v3480_v22 = vld [vmem:[%s4618_s3 + $0x3ac] ss:$16 sps:$4 sm:$0xff]  }
 0x138   : > { %v539_v44 = vadd.f32 %v538_v29, %v3977_v37  ;;  %v540_v45 = vpop.f32.mrb[26].mxu0  ;;  %1636 = vmatprep.mubr.bf16.mxu0 %v753_v21  ;;  %1862 = vmatprep.mubr.bf16.mxu1 %v753_v21  ;;  %v4207_v8 = vpack.c.bf16 %v715_v2, %v711_v55  ;;  %v649_v10 = vpop.f32.mrb[24].mxu1  ;;  %v3477_v21 = vld [vmem:[%s4618_s3 + $0x3a4] ss:$16 sps:$4 sm:$0xff]  }
 0x139   : > { %v541_v50 = vadd.f32 %v540_v45, %v3973_v36  ;;  %v542_v52 = vpop.f32.mrb[27].mxu0  ;;  %1637 = vmatmul.mubr.bf16.gmra.mrb[52].mxu0 %v752_v18  ;;  %1863 = vmatmul.mubr.bf16.gmra.mrb[52].mxu1 %v752_v18  ;;  %v716_v62 = vmax.f32 %v537_v28, 0.0  ;;  %v650_v15 = vadd.f32 %v649_v10, %v3987_v48  ;;  %v651_v16 = vpop.f32.mrb[25].mxu1 }
 0x13a   : > { %v543_v58 = vadd.f32 %v542_v52, %v3977_v37  ;;  %1688 = vmatpush1.bf16.msra.mxu0 %v3457_v23  ;;  %1914 = vmatpush1.bf16.msra.mxu1 %v3460_v24  ;;  %v717_v3 = vmax.f32 %v539_v44, 0.0  ;;  %v652_v23 = vadd.f32 %v651_v16, %v3991_v51  ;;  %v653_v24 = vpop.f32.mrb[26].mxu1 }
 0x13b   : > { %v720_v63 = vmax.f32 %v541_v50, 0.0  ;;  %1689 = vmatprep.subr.bf16.mxu0 %v3465_v34  ;;  %1915 = vmatprep.subr.bf16.mxu1 %v3468_v40  ;;  %v718_v28 = vmax.f32 %v650_v15, 0.0  ;;  %v654_v29 = vadd.f32 %v653_v24, %v3987_v48  ;;  %v655_v34 = vpop.f32.mrb[27].mxu1 }
 0x13c   : > { %v721_v4 = vmax.f32 %v543_v58, 0.0  ;;  %v719_v44 = vmax.f32 %v652_v23, 0.0  ;;  %v656_v45 = vadd.f32 %v655_v34, %v3991_v51  ;;  %v3495_v23 = vld [vmem:[#allocation2 + $0xc0] sm:$0xff]   ;;  %v3500_v34 = vld [vmem:[#allocation2 + $0x88] sm:$0xff]  }
 0x13d   : > { %v756_v6 = vpack.c.bf16 %v720_v63, %v716_v62  ;;  %v722_v49 = vmax.f32 %v654_v29, 0.0  ;;  %v3481_v63 = vld [vmem:[%s4618_s3 + $0x3c0] ss:$16 sps:$4 sm:$0xff]   ;;  %v3499_v29 = vld [vmem:[#allocation2 + $0xc8] sm:$0xff]  }
 0x13e   : > { %v757_v11 = vpack.c.bf16 %v721_v4, %v717_v3  ;;  %1690 = vmatpush1.bf16.msra.mxu0 %v3463_v53  ;;  %v546_v12 = vpop.f32.mrb[28].mxu0  ;;  %1916 = vmatpush1.bf16.msra.mxu1 %v3466_v59  ;;  %v3486_v53 = vld [vmem:[%s4618_s3 + $0x3cc] ss:$16 sps:$4 sm:$0xff]   ;;  %v3489_v4 = vld [vmem:[%s4618_s3 + $0x3e4] ss:$16 sps:$4 sm:$0xff]  }
 0x13f   : > { %v547_v18 = vadd.f32 %v546_v12, %v3973_v36  ;;  %v548_v20 = vpop.f32.mrb[29].mxu0  ;;  %1691 = vmatprep.subr.bf16.mxu0 %v3471_v60  ;;  %1917 = vmatprep.subr.bf16.mxu1 %v3474_v1  ;;  %v4241_v58 = vpack.c.bf16 %v722_v49, %v718_v28  ;;  %v3484_v1 = vld [vmem:[%s4618_s3 + $0x3c8] ss:$16 sps:$4 sm:$0xff]   ;;  %v3510_v49 = vld [vmem:[#allocation2 + $0x20] sm:$0xff]  }
 0x140   : > { %v549_v25 = vadd.f32 %v548_v20, %v3977_v37  ;;  %v550_v27 = vpop.f32.mrb[30].mxu0  ;;  %1646 = vmatprep.mubr.bf16.mxu0 %v757_v11  ;;  %1872 = vmatprep.mubr.bf16.mxu1 %v757_v11  ;;  %v659_v61 = vpop.f32.mrb[28].mxu1  ;;  %v3492_v11 = vld [vmem:[%s4618_s3 + $0x3ec] ss:$16 sps:$4 sm:$0xff]   ;;  %v3490_v20 = vld [vmem:[%s4618_s3 + $0x3e8] ss:$16 sps:$4 sm:$0xff]  }
 0x141   : > { %v551_v40 = vadd.f32 %v550_v27, %v3973_v36  ;;  %v552_v41 = vpop.f32.mrb[31].mxu0  ;;  %1647 = vmatmul.mubr.bf16.gmra.mrb[56].mxu0 %v756_v6  ;;  %1873 = vmatmul.mubr.bf16.gmra.mrb[56].mxu1 %v756_v6  ;;  %v3483_v36 = vld [vmem:[%s4618_s3 + $0x3c4] ss:$16 sps:$4 sm:$0xff]   ;;  %v724_v50 = vmax.f32 %v547_v18, 0.0  ;;  %v660_v2 = vadd.f32 %v659_v61, %v3987_v48  ;;  %v661_v3 = vpop.f32.mrb[29].mxu1  ;;  %v3497_v28 = vld [vmem:[#allocation2 + $0x48] sm:$0xff]  }
 0x142   : > { %v553_v46 = vadd.f32 %v552_v41, %v3977_v37  ;;  %1692 = vmatpush1.bf16.msra.mxu0 %v3469_v13  ;;  %1918 = vmatpush1.bf16.msra.mxu1 %v3472_v14  ;;  %v723_v37 = vmax.f32 %v656_v45, 0.0  ;;  %v725_v55 = vmax.f32 %v549_v25, 0.0  ;;  %v662_v6 = vadd.f32 %v661_v3, %v3991_v51  ;;  %v663_v10 = vpop.f32.mrb[30].mxu1  ;;  %v3487_v18 = vld [vmem:[%s4618_s3 + $0x3e0] ss:$16 sps:$4 sm:$0xff]   ;;  %v3505_v45 = vld [vmem:[#allocation2 + $0x58] sm:$0xff]  }
 0x143   : > { %v728_v52 = vmax.f32 %v551_v40, 0.0  ;;  %1693 = vmatprep.subr.bf16.mxu0 %v3477_v21  ;;  %1919 = vmatprep.subr.bf16.mxu1 %v3480_v22  ;;  %v726_v12 = vmax.f32 %v660_v2, 0.0  ;;  %v664_v13 = vadd.f32 %v663_v10, %v3987_v48  ;;  %v665_v14 = vpop.f32.mrb[31].mxu1  ;;  %v3493_v22 = vld [vmem:[#allocation2 + $0x40] sm:$0xff]   ;;  %v3501_v40 = vld [vmem:[#allocation2 + $0x50] sm:$0xff]  }
 0x144   : > { %v729_v57 = vmax.f32 %v553_v46, 0.0  ;;  %v4243_v60 = vpack.c.bf16 %v723_v37, %v719_v44  ;;  %v727_v15 = vmax.f32 %v662_v6, 0.0  ;;  %v666_v16 = vadd.f32 %v665_v14, %v3991_v51  ;;  %v3494_v25 = vld [vmem:[#allocation2] sm:$0xff]   ;;  %v3503_v41 = vld [vmem:[#allocation2 + $0xd0] sm:$0xff]   ;;  %v3508_v46 = vld [vmem:[#allocation2 + $0x98] sm:$0xff]  }
 0x145   : > { %v760_v59 = vpack.c.bf16 %v728_v52, %v724_v50  ;;  %v730_v21 = vmax.f32 %v664_v13, 0.0  ;;  %v3496_v27 = vld [vmem:[#allocation2 + $0x80] sm:$0xff]   ;;  %v3504_v44 = vld [vmem:[#allocation2 + $0x90] sm:$0xff]   ;;  %v3513_v52 = vld [vmem:[#allocation2 + $0x68] sm:$0xff]  }
 0x146   : > { %v761_v62 = vpack.c.bf16 %v729_v57, %v725_v55  ;;  %1694 = vmatpush1.bf16.msra.mxu0 %v3475_v43  ;;  %1920 = vmatpush1.bf16.msra.mxu1 %v3478_v47  ;;  %v731_v48 = vmax.f32 %v666_v16, 0.0  ;;  %v3502_v43 = vld [vmem:[#allocation2 + $0x10] sm:$0xff]   ;;  %v3509_v47 = vld [vmem:[#allocation2 + $0x60] sm:$0xff]  }
 0x147   : > { %1695 = vmatprep.subr.bf16.mxu0 %v3483_v36  ;;  %1921 = vmatprep.subr.bf16.mxu1 %v3486_v53  ;;  %v4269_v51 = vpack.c.bf16 %v730_v21, %v726_v12  ;;  %v3511_v36 = vld [vmem:[#allocation2 + $0xe0] sm:$0xff]   ;;  %v3516_v53 = vld [vmem:[#allocation2 + $0xa8] sm:$0xff]   ;;  %v3517_v37 = vld [vmem:[#allocation2 + $0x70] sm:$0xff]  }
 0x148   : > { %1656 = vmatprep.mubr.bf16.mxu0 %v761_v62  ;;  %1882 = vmatprep.mubr.bf16.mxu1 %v761_v62  ;;  %v4271_v24 = vpack.c.bf16 %v731_v48, %v727_v15  ;;  %v3512_v50 = vld [vmem:[#allocation2 + $0xa0] sm:$0xff]   ;;  %v3519_v55 = vld [vmem:[#allocation2 + $0xf0] sm:$0xff]  }
 0x149   : > { %1657 = vmatmul.mubr.bf16.gmra.mrb[60].mxu0 %v760_v59  ;;  %1883 = vmatmul.mubr.bf16.gmra.mrb[60].mxu1 %v760_v59  ;;  %v3518_v57 = vld [vmem:[#allocation2 + $0x30] sm:$0xff]  }
 0x14a   : > { %1696 = vmatpush1.bf16.msra.mxu0 %v3481_v63  ;;  %1922 = vmatpush1.bf16.msra.mxu1 %v3484_v1  ;;  %v3520_v59 = vld [vmem:[#allocation2 + $0xb0] sm:$0xff]  }
 0x14b   : > { %1697 = vmatprep.subr.bf16.mxu0 %v3489_v4  ;;  %1699 = vmatprep.mubr.bf16.mxu0 %v4027_v26 }
 0x14c   : > { %1923 = vmatprep.subr.bf16.mxu1 %v3492_v11  ;;  %1925 = vmatprep.mubr.bf16.mxu1 %v4027_v26  ;;  %v3498_v26 = vld [vmem:[#allocation2 + $0x8] sm:$0xff]  }
 0x14e   : > { %1698 = vmatpush1.bf16.msra.mxu0 %v3487_v18  ;;  %1924 = vmatpush1.bf16.msra.mxu1 %v3490_v20 }
 0x14f   : > { %3016 = vmatprep.subr.bf16.mxu0 %v3493_v22  ;;  %3080 = vmatprep.subr.bf16.mxu1 %v3495_v23 }
 0x151   : > { %1700 = vmatmul.mubr.bf16.vlgmr.msra.gmra.mrb[32].mxu0 %v4025_v0  ;;  %1926 = vmatmul.mubr.bf16.vlgmr.msra.gmra.mrb[32].mxu1 %v4025_v0  ;;  %v3507_v0 = vld [vmem:[#allocation2 + $0xd8] sm:$0xff]  }
 0x152   : > { %1709 = vmatprep.mubr.bf16.mxu0 %v4063_v9  ;;  %1935 = vmatprep.mubr.bf16.mxu1 %v4063_v9  ;;  %v3506_v9 = vld [vmem:[#allocation2 + $0x18] sm:$0xff]  }
 0x153   : > { %3017 = vmatpush3.bf16.msra.mxu0 %v3494_v25  ;;  %3081 = vmatpush3.bf16.msra.mxu1 %v3496_v27 }
 0x154   : > { %3018 = vmatprep.subr.bf16.mxu0 %v3497_v28  ;;  %3082 = vmatprep.subr.bf16.mxu1 %v3499_v29 }
 0x157   : > { %3019 = vmatpush3.bf16.msra.mxu0 %v3498_v26  ;;  %3083 = vmatpush3.bf16.msra.mxu1 %v3500_v34 }
 0x158   : > { %3020 = vmatprep.subr.bf16.mxu0 %v3501_v40  ;;  %3084 = vmatprep.subr.bf16.mxu1 %v3503_v41 }
 0x159   : > { %1710 = vmatmul.mubr.bf16.gmra.mrb[36].mxu0 %v4061_v7  ;;  %1936 = vmatmul.mubr.bf16.gmra.mrb[36].mxu1 %v4061_v7  ;;  %v3515_v7 = vld [vmem:[#allocation2 + $0xe8] sm:$0xff]  }
 0x15a   : > { %1719 = vmatprep.mubr.bf16.mxu0 %v4099_v56  ;;  %1945 = vmatprep.mubr.bf16.mxu1 %v4099_v56  ;;  %v3514_v56 = vld [vmem:[#allocation2 + $0x28] sm:$0xff]  }
 0x15b   : > { %3021 = vmatpush3.bf16.msra.mxu0 %v3502_v43  ;;  %3085 = vmatpush3.bf16.msra.mxu1 %v3504_v44 }
 0x15c   : > { %3022 = vmatprep.subr.bf16.mxu0 %v3505_v45  ;;  %3086 = vmatprep.subr.bf16.mxu1 %v3507_v0 }
 0x15f   : > { %3023 = vmatpush3.bf16.msra.mxu0 %v3506_v9  ;;  %3087 = vmatpush3.bf16.msra.mxu1 %v3508_v46 }
 0x160   : > { %3024 = vmatprep.subr.bf16.mxu0 %v3509_v47  ;;  %3088 = vmatprep.subr.bf16.mxu1 %v3511_v36 }
 0x161   : > { %1720 = vmatmul.mubr.bf16.gmra.mrb[40].mxu0 %v4097_v54  ;;  %1946 = vmatmul.mubr.bf16.gmra.mrb[40].mxu1 %v4097_v54  ;;  %v3521_v54 = vld [vmem:[#allocation2 + $0x78] sm:$0xff]  }
 0x162   : > { %1729 = vmatprep.mubr.bf16.mxu0 %v4135_v38  ;;  %1955 = vmatprep.mubr.bf16.mxu1 %v4135_v38  ;;  %v3522_v38 = vld [vmem:[#allocation2 + $0x38] sm:$0xff]  }
 0x163   : > { %3025 = vmatpush3.bf16.msra.mxu0 %v3510_v49  ;;  %3089 = vmatpush3.bf16.msra.mxu1 %v3512_v50 }
 0x164   : > { %3026 = vmatprep.subr.bf16.mxu0 %v3513_v52  ;;  %3090 = vmatprep.subr.bf16.mxu1 %v3515_v7 }
 0x167   : > { %3027 = vmatpush3.bf16.msra.mxu0 %v3514_v56  ;;  %3091 = vmatpush3.bf16.msra.mxu1 %v3516_v53 }
 0x168   : > { %3028 = vmatprep.subr.bf16.mxu0 %v3517_v37  ;;  %3092 = vmatprep.subr.bf16.mxu1 %v3519_v55 }
 0x169   : > { %1730 = vmatmul.mubr.bf16.gmra.mrb[44].mxu0 %v4133_v30  ;;  %1956 = vmatmul.mubr.bf16.gmra.mrb[44].mxu1 %v4133_v30  ;;  %v3523_v30 = vld [vmem:[#allocation2 + $0xf8] sm:$0xff]  }
 0x16a   : > { %1739 = vmatprep.mubr.bf16.mxu0 %v4171_v19  ;;  %1965 = vmatprep.mubr.bf16.mxu1 %v4171_v19  ;;  %v892_v19 = vld [vmem:[%s4619_s4] sm:$0xf] }
 0x16b   : > { %3029 = vmatpush3.bf16.msra.mxu0 %v3518_v57  ;;  %3093 = vmatpush3.bf16.msra.mxu1 %v3520_v59 }
 0x16c   : > { %3030 = vmatprep.subr.bf16.mxu0 %v3521_v54  ;;  %3094 = vmatprep.subr.bf16.mxu1 %v3523_v30 }
 0x16f   : > { %3031 = vmatpush3.bf16.msra.mxu0 %v3522_v38 }
 0x171   : > { %1740 = vmatmul.mubr.bf16.gmra.mrb[48].mxu0 %v4169_v17  ;;  %1966 = vmatmul.mubr.bf16.gmra.mrb[48].mxu1 %v4169_v17  ;;  %v3524_v17 = vld [vmem:[#allocation2 + $0xb8] sm:$0xff]  }
 0x172   : > { %1749 = vmatprep.mubr.bf16.mxu0 %v4207_v8  ;;  %1975 = vmatprep.mubr.bf16.mxu1 %v4207_v8  ;;  %v4312_v8 = vrot.slane %v892_v19, %v387_v39 }
 0x173   : > { %3095 = vmatpush3.bf16.msra.mxu1 %v3524_v17 }
 0x179   : > { %1750 = vmatmul.mubr.bf16.gmra.mrb[52].mxu0 %v4205_v5  ;;  %1976 = vmatmul.mubr.bf16.gmra.mrb[52].mxu1 %v4205_v5  ;;  %v4308_v5 = vrot.slane %v892_v19, %v379_v33 }
 0x17a   : > { %1759 = vmatprep.mubr.bf16.mxu0 %v4243_v60  ;;  %1985 = vmatprep.mubr.bf16.mxu1 %v4243_v60  ;;  %v4320_v60 = vrot.slane %v892_v19, %v391_v42 }
 0x181   : > { %1760 = vmatmul.mubr.bf16.gmra.mrb[56].mxu0 %v4241_v58  ;;  %1986 = vmatmul.mubr.bf16.gmra.mrb[56].mxu1 %v4241_v58  ;;  %v4316_v58 = vrot.slane %v892_v19, %v383_v35 }
 0x182   : > { %1769 = vmatprep.mubr.bf16.mxu0 %v4271_v24  ;;  %1995 = vmatprep.mubr.bf16.mxu1 %v4271_v24 }
 0x189   : > { %1770 = vmatmul.mubr.bf16.gmra.mrb[60].mxu0 %v4269_v51  ;;  %1996 = vmatmul.mubr.bf16.gmra.mrb[60].mxu1 %v4269_v51 }
 0x224   : > { %v1701_v61 = vpop.f32.mrb[32].mxu0  ;;  %v1927_v62 = vpop.f32.mrb[32].mxu1 }
 0x225   : > { %v3144_v63 = vadd.f32 %v1701_v61, %v4308_v5  ;;  %v3176_v1 = vadd.f32 %v1927_v62, %v4312_v8  ;;  %v1703_v33 = vpop.f32.mrb[33].mxu0  ;;  %v1929_v2 = vpop.f32.mrb[33].mxu1 }
 0x226   : > { %v3145_v3 = vadd.f32 %v1703_v33, %v4316_v58  ;;  %v3177_v39 = vadd.f32 %v1929_v2, %v4320_v60  ;;  %v1705_v4 = vpop.f32.mrb[34].mxu0  ;;  %v1931_v6 = vpop.f32.mrb[34].mxu1 }
 0x227   : > { %v3146_v35 = vadd.f32 %v1705_v4, %v4308_v5  ;;  %v3178_v32 = vadd.f32 %v1931_v6, %v4312_v8  ;;  %v1707_v42 = vpop.f32.mrb[35].mxu0  ;;  %v1933_v10 = vpop.f32.mrb[35].mxu1  ;;  %v2006_v13 = vmax.f32 %v3144_v63, 0.0  ;;  %v2008_v14 = vmax.f32 %v3176_v1, 0.0 }
 0x228   : > { %v3147_v11 = vadd.f32 %v1707_v42, %v4316_v58  ;;  %v3179_v12 = vadd.f32 %v1933_v10, %v4320_v60  ;;  %v2007_v18 = vmax.f32 %v3145_v3, 0.0  ;;  %v2009_v20 = vmax.f32 %v3177_v39, 0.0 }
 0x229   : > { %v2010_v15 = vmax.f32 %v3146_v35, 0.0  ;;  %v2012_v16 = vmax.f32 %v3178_v32, 0.0 }
 0x22a   : > { %v2011_v21 = vmax.f32 %v3147_v11, 0.0  ;;  %v2013_v48 = vmax.f32 %v3179_v12, 0.0 }
 0x22b   : > { %v2070_v22 = vpack.c.bf16 %v2010_v15, %v2006_v13  ;;  %v2072_v23 = vpack.c.bf16 %v2012_v16, %v2008_v14 }
 0x22c   : > { %v2071_v51 = vpack.c.bf16 %v2011_v21, %v2007_v18  ;;  %v2073_v24 = vpack.c.bf16 %v2013_v48, %v2009_v20  ;;  %v1711_v25 = vpop.f32.mrb[36].mxu0  ;;  %v1937_v27 = vpop.f32.mrb[36].mxu1 }
 0x22d   : > { %v3148_v28 = vadd.f32 %v1711_v25, %v4308_v5  ;;  %v3180_v29 = vadd.f32 %v1937_v27, %v4312_v8  ;;  %v1713_v26 = vpop.f32.mrb[37].mxu0  ;;  %v1939_v34 = vpop.f32.mrb[37].mxu1 }
 0x22e   : > { %v3149_v40 = vadd.f32 %v1713_v26, %v4316_v58  ;;  %v3181_v41 = vadd.f32 %v1939_v34, %v4320_v60  ;;  %v1715_v43 = vpop.f32.mrb[38].mxu0  ;;  %v1941_v44 = vpop.f32.mrb[38].mxu1  ;;  %2397 = vmatprep.mubr.bf16.mxu0 %v2071_v51  ;;  %2494 = vmatprep.mubr.bf16.mxu1 %v2073_v24 }
 0x22f   : > { %v3150_v45 = vadd.f32 %v1715_v43, %v4308_v5  ;;  %v3182_v0 = vadd.f32 %v1941_v44, %v4312_v8  ;;  %v1717_v9 = vpop.f32.mrb[39].mxu0  ;;  %v1943_v46 = vpop.f32.mrb[39].mxu1  ;;  %2398 = vmatmul.mubr.bf16.vlgmr.msra.gmra.mrb[64].mxu0 %v2070_v22  ;;  %2495 = vmatmul.mubr.bf16.vlgmr.msra.gmra.mrb[64].mxu1 %v2072_v23  ;;  %v2014_v49 = vmax.f32 %v3148_v28, 0.0  ;;  %v2016_v50 = vmax.f32 %v3180_v29, 0.0 }
 0x230   : > { %v3151_v47 = vadd.f32 %v1717_v9, %v4316_v58  ;;  %v3183_v36 = vadd.f32 %v1943_v46, %v4320_v60  ;;  %v2015_v56 = vmax.f32 %v3149_v40, 0.0  ;;  %v2017_v53 = vmax.f32 %v3181_v41, 0.0 }
 0x231   : > { %v2018_v52 = vmax.f32 %v3150_v45, 0.0  ;;  %v2020_v7 = vmax.f32 %v3182_v0, 0.0 }
 0x232   : > { %v2019_v37 = vmax.f32 %v3151_v47, 0.0  ;;  %v2021_v55 = vmax.f32 %v3183_v36, 0.0 }
 0x233   : > { %v2074_v57 = vpack.c.bf16 %v2018_v52, %v2014_v49  ;;  %v2076_v59 = vpack.c.bf16 %v2020_v7, %v2016_v50 }
 0x234   : > { %v2075_v54 = vpack.c.bf16 %v2019_v37, %v2015_v56  ;;  %v2077_v30 = vpack.c.bf16 %v2021_v55, %v2017_v53  ;;  %v1721_v38 = vpop.f32.mrb[40].mxu0  ;;  %v1947_v17 = vpop.f32.mrb[40].mxu1 }
 0x235   : > { %v3152_v19 = vadd.f32 %v1721_v38, %v4308_v5  ;;  %v3184_v61 = vadd.f32 %v1947_v17, %v4312_v8  ;;  %v1723_v62 = vpop.f32.mrb[41].mxu0  ;;  %v1949_v63 = vpop.f32.mrb[41].mxu1 }
 0x236   : > { %v3153_v1 = vadd.f32 %v1723_v62, %v4316_v58  ;;  %v3185_v33 = vadd.f32 %v1949_v63, %v4320_v60  ;;  %v1725_v2 = vpop.f32.mrb[42].mxu0  ;;  %v1951_v3 = vpop.f32.mrb[42].mxu1  ;;  %2405 = vmatprep.mubr.bf16.mxu0 %v2075_v54  ;;  %2502 = vmatprep.mubr.bf16.mxu1 %v2077_v30 }
 0x237   : > { %v3154_v39 = vadd.f32 %v1725_v2, %v4308_v5  ;;  %v3186_v4 = vadd.f32 %v1951_v3, %v4312_v8  ;;  %v1727_v6 = vpop.f32.mrb[43].mxu0  ;;  %v1953_v35 = vpop.f32.mrb[43].mxu1  ;;  %2406 = vmatmul.mubr.bf16.gmra.mrb[68].mxu0 %v2074_v57  ;;  %2503 = vmatmul.mubr.bf16.gmra.mrb[68].mxu1 %v2076_v59  ;;  %v2022_v10 = vmax.f32 %v3152_v19, 0.0  ;;  %v2024_v11 = vmax.f32 %v3184_v61, 0.0 }
 0x238   : > { %v3155_v32 = vadd.f32 %v1727_v6, %v4316_v58  ;;  %v3187_v42 = vadd.f32 %v1953_v35, %v4320_v60  ;;  %v2023_v14 = vmax.f32 %v3153_v1, 0.0  ;;  %v2025_v15 = vmax.f32 %v3185_v33, 0.0 }
 0x239   : > { %v2026_v12 = vmax.f32 %v3154_v39, 0.0  ;;  %v2028_v13 = vmax.f32 %v3186_v4, 0.0 }
 0x23a   : > { %v2027_v16 = vmax.f32 %v3155_v32, 0.0  ;;  %v2029_v18 = vmax.f32 %v3187_v42, 0.0 }
 0x23b   : > { %v2078_v20 = vpack.c.bf16 %v2026_v12, %v2022_v10  ;;  %v2080_v21 = vpack.c.bf16 %v2028_v13, %v2024_v11 }
 0x23c   : > { %v2079_v48 = vpack.c.bf16 %v2027_v16, %v2023_v14  ;;  %v2081_v22 = vpack.c.bf16 %v2029_v18, %v2025_v15  ;;  %v1731_v23 = vpop.f32.mrb[44].mxu0  ;;  %v1957_v51 = vpop.f32.mrb[44].mxu1 }
 0x23d   : > { %v3156_v24 = vadd.f32 %v1731_v23, %v4308_v5  ;;  %v3188_v25 = vadd.f32 %v1957_v51, %v4312_v8  ;;  %v1733_v27 = vpop.f32.mrb[45].mxu0  ;;  %v1959_v28 = vpop.f32.mrb[45].mxu1 }
 0x23e   : > { %v3157_v29 = vadd.f32 %v1733_v27, %v4316_v58  ;;  %v3189_v26 = vadd.f32 %v1959_v28, %v4320_v60  ;;  %v1735_v34 = vpop.f32.mrb[46].mxu0  ;;  %v1961_v40 = vpop.f32.mrb[46].mxu1  ;;  %2413 = vmatprep.mubr.bf16.mxu0 %v2079_v48  ;;  %2510 = vmatprep.mubr.bf16.mxu1 %v2081_v22 }
 0x23f   : > { %v3158_v41 = vadd.f32 %v1735_v34, %v4308_v5  ;;  %v3190_v43 = vadd.f32 %v1961_v40, %v4312_v8  ;;  %v1737_v44 = vpop.f32.mrb[47].mxu0  ;;  %v1963_v45 = vpop.f32.mrb[47].mxu1  ;;  %2414 = vmatmul.mubr.bf16.gmra.mrb[72].mxu0 %v2078_v20  ;;  %2511 = vmatmul.mubr.bf16.gmra.mrb[72].mxu1 %v2080_v21  ;;  %v2030_v46 = vmax.f32 %v3156_v24, 0.0  ;;  %v2032_v47 = vmax.f32 %v3188_v25, 0.0 }
 0x240   : > { %v3159_v0 = vadd.f32 %v1737_v44, %v4316_v58  ;;  %v3191_v9 = vadd.f32 %v1963_v45, %v4320_v60  ;;  %v2031_v50 = vmax.f32 %v3157_v29, 0.0  ;;  %v2033_v52 = vmax.f32 %v3189_v26, 0.0 }
 0x241   : > { %v2034_v36 = vmax.f32 %v3158_v41, 0.0  ;;  %v2036_v49 = vmax.f32 %v3190_v43, 0.0 }
 0x242   : > { %v2035_v7 = vmax.f32 %v3159_v0, 0.0  ;;  %v2037_v56 = vmax.f32 %v3191_v9, 0.0 }
 0x243   : > { %v2082_v53 = vpack.c.bf16 %v2034_v36, %v2030_v46  ;;  %v2084_v37 = vpack.c.bf16 %v2036_v49, %v2032_v47 }
 0x244   : > { %v2083_v55 = vpack.c.bf16 %v2035_v7, %v2031_v50  ;;  %v2085_v57 = vpack.c.bf16 %v2037_v56, %v2033_v52  ;;  %v1741_v59 = vpop.f32.mrb[48].mxu0  ;;  %v1967_v54 = vpop.f32.mrb[48].mxu1 }
 0x245   : > { %v3160_v30 = vadd.f32 %v1741_v59, %v4308_v5  ;;  %v3192_v38 = vadd.f32 %v1967_v54, %v4312_v8  ;;  %v1743_v17 = vpop.f32.mrb[49].mxu0  ;;  %v1969_v19 = vpop.f32.mrb[49].mxu1 }
 0x246   : > { %v3161_v61 = vadd.f32 %v1743_v17, %v4316_v58  ;;  %v3193_v62 = vadd.f32 %v1969_v19, %v4320_v60  ;;  %v1745_v63 = vpop.f32.mrb[50].mxu0  ;;  %v1971_v1 = vpop.f32.mrb[50].mxu1  ;;  %2421 = vmatprep.mubr.bf16.mxu0 %v2083_v55  ;;  %2518 = vmatprep.mubr.bf16.mxu1 %v2085_v57 }
 0x247   : > { %v3162_v33 = vadd.f32 %v1745_v63, %v4308_v5  ;;  %v3194_v2 = vadd.f32 %v1971_v1, %v4312_v8  ;;  %v1747_v3 = vpop.f32.mrb[51].mxu0  ;;  %v1973_v39 = vpop.f32.mrb[51].mxu1  ;;  %2422 = vmatmul.mubr.bf16.gmra.mrb[76].mxu0 %v2082_v53  ;;  %2519 = vmatmul.mubr.bf16.gmra.mrb[76].mxu1 %v2084_v37  ;;  %v2038_v35 = vmax.f32 %v3160_v30, 0.0  ;;  %v2040_v32 = vmax.f32 %v3192_v38, 0.0 }
 0x248   : > { %v3163_v4 = vadd.f32 %v1747_v3, %v4316_v58  ;;  %v3195_v6 = vadd.f32 %v1973_v39, %v4320_v60  ;;  %v2039_v11 = vmax.f32 %v3161_v61, 0.0  ;;  %v2041_v12 = vmax.f32 %v3193_v62, 0.0 }
 0x249   : > { %v2042_v42 = vmax.f32 %v3162_v33, 0.0  ;;  %v2044_v10 = vmax.f32 %v3194_v2, 0.0 }
 0x24a   : > { %v2043_v13 = vmax.f32 %v3163_v4, 0.0  ;;  %v2045_v14 = vmax.f32 %v3195_v6, 0.0 }
 0x24b   : > { %v2086_v15 = vpack.c.bf16 %v2042_v42, %v2038_v35  ;;  %v2088_v16 = vpack.c.bf16 %v2044_v10, %v2040_v32 }
 0x24c   : > { %v2087_v18 = vpack.c.bf16 %v2043_v13, %v2039_v11  ;;  %v2089_v20 = vpack.c.bf16 %v2045_v14, %v2041_v12  ;;  %v1751_v21 = vpop.f32.mrb[52].mxu0  ;;  %v1977_v48 = vpop.f32.mrb[52].mxu1 }
 0x24d   : > { %v3164_v22 = vadd.f32 %v1751_v21, %v4308_v5  ;;  %v3196_v23 = vadd.f32 %v1977_v48, %v4312_v8  ;;  %v1753_v51 = vpop.f32.mrb[53].mxu0  ;;  %v1979_v24 = vpop.f32.mrb[53].mxu1 }
 0x24e   : > { %v3165_v25 = vadd.f32 %v1753_v51, %v4316_v58  ;;  %v3197_v27 = vadd.f32 %v1979_v24, %v4320_v60  ;;  %v1755_v28 = vpop.f32.mrb[54].mxu0  ;;  %v1981_v29 = vpop.f32.mrb[54].mxu1  ;;  %2429 = vmatprep.mubr.bf16.mxu0 %v2087_v18  ;;  %2526 = vmatprep.mubr.bf16.mxu1 %v2089_v20 }
 0x24f   : > { %v3166_v26 = vadd.f32 %v1755_v28, %v4308_v5  ;;  %v3198_v34 = vadd.f32 %v1981_v29, %v4312_v8  ;;  %v1757_v40 = vpop.f32.mrb[55].mxu0  ;;  %v1983_v41 = vpop.f32.mrb[55].mxu1  ;;  %2430 = vmatmul.mubr.bf16.gmra.mrb[80].mxu0 %v2086_v15  ;;  %2527 = vmatmul.mubr.bf16.gmra.mrb[80].mxu1 %v2088_v16  ;;  %v2046_v45 = vmax.f32 %v3164_v22, 0.0  ;;  %v2048_v0 = vmax.f32 %v3196_v23, 0.0 }
 0x250   : > { %v3167_v43 = vadd.f32 %v1757_v40, %v4316_v58  ;;  %v3199_v44 = vadd.f32 %v1983_v41, %v4320_v60  ;;  %v2047_v47 = vmax.f32 %v3165_v25, 0.0  ;;  %v2049_v36 = vmax.f32 %v3197_v27, 0.0 }
 0x251   : > { %v2050_v9 = vmax.f32 %v3166_v26, 0.0  ;;  %v2052_v46 = vmax.f32 %v3198_v34, 0.0 }
 0x252   : > { %v2051_v49 = vmax.f32 %v3167_v43, 0.0  ;;  %v2053_v50 = vmax.f32 %v3199_v44, 0.0 }
 0x253   : > { %v2090_v52 = vpack.c.bf16 %v2050_v9, %v2046_v45  ;;  %v2092_v7 = vpack.c.bf16 %v2052_v46, %v2048_v0 }
 0x254   : > { %v2091_v56 = vpack.c.bf16 %v2051_v49, %v2047_v47  ;;  %v2093_v53 = vpack.c.bf16 %v2053_v50, %v2049_v36  ;;  %v1761_v37 = vpop.f32.mrb[56].mxu0  ;;  %v1987_v55 = vpop.f32.mrb[56].mxu1 }
 0x255   : > { %v3168_v57 = vadd.f32 %v1761_v37, %v4308_v5  ;;  %v3200_v59 = vadd.f32 %v1987_v55, %v4312_v8  ;;  %v1763_v54 = vpop.f32.mrb[57].mxu0  ;;  %v1989_v30 = vpop.f32.mrb[57].mxu1 }
 0x256   : > { %v3169_v38 = vadd.f32 %v1763_v54, %v4316_v58  ;;  %v3201_v17 = vadd.f32 %v1989_v30, %v4320_v60  ;;  %v1765_v19 = vpop.f32.mrb[58].mxu0  ;;  %v1991_v61 = vpop.f32.mrb[58].mxu1  ;;  %2437 = vmatprep.mubr.bf16.mxu0 %v2091_v56  ;;  %2534 = vmatprep.mubr.bf16.mxu1 %v2093_v53 }
 0x257   : > { %v3170_v62 = vadd.f32 %v1765_v19, %v4308_v5  ;;  %v3202_v63 = vadd.f32 %v1991_v61, %v4312_v8  ;;  %v1767_v1 = vpop.f32.mrb[59].mxu0  ;;  %v1993_v33 = vpop.f32.mrb[59].mxu1  ;;  %2438 = vmatmul.mubr.bf16.gmra.mrb[84].mxu0 %v2090_v52  ;;  %2535 = vmatmul.mubr.bf16.gmra.mrb[84].mxu1 %v2092_v7  ;;  %v2054_v39 = vmax.f32 %v3168_v57, 0.0  ;;  %v2056_v4 = vmax.f32 %v3200_v59, 0.0 }
 0x258   : > { %v3171_v2 = vadd.f32 %v1767_v1, %v4316_v58  ;;  %v3203_v3 = vadd.f32 %v1993_v33, %v4320_v60  ;;  %v2055_v32 = vmax.f32 %v3169_v38, 0.0  ;;  %v2057_v42 = vmax.f32 %v3201_v17, 0.0 }
 0x259   : > { %v2058_v6 = vmax.f32 %v3170_v62, 0.0  ;;  %v2060_v35 = vmax.f32 %v3202_v63, 0.0 }
 0x25a   : > { %v2059_v10 = vmax.f32 %v3171_v2, 0.0  ;;  %v2061_v11 = vmax.f32 %v3203_v3, 0.0 }
 0x25b   : > { %v2094_v12 = vpack.c.bf16 %v2058_v6, %v2054_v39  ;;  %v2096_v13 = vpack.c.bf16 %v2060_v35, %v2056_v4 }
 0x25c   : > { %v2095_v14 = vpack.c.bf16 %v2059_v10, %v2055_v32  ;;  %v2097_v15 = vpack.c.bf16 %v2061_v11, %v2057_v42  ;;  %v1771_v16 = vpop.f32.mrb[60].mxu0  ;;  %v1997_v18 = vpop.f32.mrb[60].mxu1 }
 0x25d   : > { %v3172_v20 = vadd.f32 %v1771_v16, %v4308_v5  ;;  %v3204_v21 = vadd.f32 %v1997_v18, %v4312_v8  ;;  %v1773_v48 = vpop.f32.mrb[61].mxu0  ;;  %v1999_v22 = vpop.f32.mrb[61].mxu1 }
 0x25e   : > { %v3173_v23 = vadd.f32 %v1773_v48, %v4316_v58  ;;  %v3205_v51 = vadd.f32 %v1999_v22, %v4320_v60  ;;  %v1775_v24 = vpop.f32.mrb[62].mxu0  ;;  %v2001_v25 = vpop.f32.mrb[62].mxu1  ;;  %2445 = vmatprep.mubr.bf16.mxu0 %v2095_v14  ;;  %2542 = vmatprep.mubr.bf16.mxu1 %v2097_v15 }
 0x25f   : > { %v3174_v27 = vadd.f32 %v1775_v24, %v4308_v5  ;;  %v3206_v28 = vadd.f32 %v2001_v25, %v4312_v8  ;;  %v1777_v29 = vpop.f32.mrb[63].mxu0  ;;  %v2003_v26 = vpop.f32.mrb[63].mxu1  ;;  %2446 = vmatmul.mubr.bf16.gmra.mrb[88].mxu0 %v2094_v12  ;;  %2543 = vmatmul.mubr.bf16.gmra.mrb[88].mxu1 %v2096_v13  ;;  %v2062_v41 = vmax.f32 %v3172_v20, 0.0  ;;  %v2064_v43 = vmax.f32 %v3204_v21, 0.0 }
 0x260   : > { %v3175_v34 = vadd.f32 %v1777_v29, %v4316_v58  ;;  %v3207_v40 = vadd.f32 %v2003_v26, %v4320_v60  ;;  %v2063_v0 = vmax.f32 %v3173_v23, 0.0  ;;  %v2065_v9 = vmax.f32 %v3205_v51, 0.0  ;;  %v4389_v60 = vld [vmem:[%s4621_s6] ss:$0 sm:$0xff] }
 0x261   : > { %v2066_v44 = vmax.f32 %v3174_v27, 0.0  ;;  %v2068_v45 = vmax.f32 %v3206_v28, 0.0  ;;  %v2560_v21 = vand.u32 127, %v377_v31 }
 0x262   : > { %v2067_v46 = vmax.f32 %v3175_v34, 0.0  ;;  %v2069_v47 = vmax.f32 %v3207_v40, 0.0 }
 0x263   : > { %v2098_v36 = vpack.c.bf16 %v2066_v44, %v2062_v41  ;;  %v2100_v5 = vpack.c.bf16 %v2068_v45, %v2064_v43  ;;  %vm2561_vm1 = vcmp.ge.s32.totalorder %v2560_v21, 64  ;;  %vm2562_vm2 = vcmp.lt.s32.totalorder %v2560_v21, 96 }
 0x264   : > { %v2099_v49 = vpack.c.bf16 %v2067_v46, %v2063_v0  ;;  %v2101_v8 = vpack.c.bf16 %v2069_v47, %v2065_v9  ;;  %vm4409_vm3 = vmand %vm2561_vm1, %vm2562_vm2 }
 0x266   : > { %2453 = vmatprep.mubr.bf16.mxu0 %v2099_v49  ;;  %2550 = vmatprep.mubr.bf16.mxu1 %v2101_v8 }
 0x267   : > { %2454 = vmatmul.mubr.bf16.gmra.mrb[92].mxu0 %v2098_v36  ;;  %2551 = vmatmul.mubr.bf16.gmra.mrb[92].mxu1 %v2100_v5  ;;  %v2677_v5 = vld [vmem:[%s4556_s26 + $0x8] sm:$0xff] }
 0x302   : > { %v3032_v50 = vpop.f32.mrb[64].mxu0  ;;  %v3096_v58 = vpop.f32.mrb[64].mxu1 }
 0x303   : > { %v3033_v52 = vpop.f32.mrb[65].mxu0  ;;  %v3097_v7 = vpop.f32.mrb[65].mxu1 }
 0x304   : > { %v3034_v56 = vadd.f32 %v3033_v52, %v3032_v50  ;;  %v3098_v53 = vadd.f32 %v3097_v7, %v3096_v58  ;;  %v3035_v37 = vpop.f32.mrb[66].mxu0  ;;  %v3099_v55 = vpop.f32.mrb[66].mxu1 }
 0x305   : > { %v3036_v57 = vpop.f32.mrb[67].mxu0  ;;  %v3100_v59 = vpop.f32.mrb[67].mxu1 }
 0x306   : > { %v2400_v54 = vadd.f32 %v3034_v56, %v4389_v60  ;;  %v3037_v30 = vadd.f32 %v3036_v57, %v3035_v37  ;;  %v3101_v38 = vadd.f32 %v3100_v59, %v3099_v55 }
 0x308   : > { %v2497_v17 = vadd.f32 %v3098_v53, %v2400_v54  ;;  %v2403_v19 = vadd.f32 %v3037_v30, %v4389_v60 }
 0x30a   : > { %v2564_v61 = vmax.f32 %v2497_v17, -4.0  ;;  %v4393_v62 = vadd.f32 %v3101_v38, %v2403_v19  ;;  %v3038_v63 = vpop.f32.mrb[68].mxu0  ;;  %v3102_v1 = vpop.f32.mrb[68].mxu1 }
 0x30b   : > { %v3039_v33 = vpop.f32.mrb[69].mxu0  ;;  %v3103_v2 = vpop.f32.mrb[69].mxu1 }
 0x30c   : > { %v2580_v3 = vmin.f32 %v2564_v61, 15.0  ;;  %v2565_v39 = vmax.f32 %v4393_v62, -4.0  ;;  %v3040_v4 = vadd.f32 %v3039_v33, %v3038_v63  ;;  %v3104_v6 = vadd.f32 %v3103_v2, %v3102_v1  ;;  %v3041_v35 = vpop.f32.mrb[70].mxu0  ;;  %v3105_v32 = vpop.f32.mrb[70].mxu1 }
 0x30d   : > { %v3042_v42 = vpop.f32.mrb[71].mxu0  ;;  %v3106_v10 = vpop.f32.mrb[71].mxu1 }
 0x30e   : > { %v2596_v11 = vmul.f32 1.442695, %v2580_v3  ;;  %v2581_v12 = vmin.f32 %v2565_v39, 15.0  ;;  %v2408_v13 = vadd.f32 %v3040_v4, %v4389_v60  ;;  %v3043_v14 = vadd.f32 %v3042_v42, %v3041_v35 }
 0x30f   : > { %v3107_v15 = vadd.f32 %v3106_v10, %v3105_v32 }
 0x310   : > { %3525 = vpow2.f32 %v2596_v11  ;;  %v2598_v16 = vmul.f32 1.442695, %v2581_v12  ;;  %v4397_v18 = vadd.f32 %v3104_v6, %v2408_v13  ;;  %v2411_v20 = vadd.f32 %v3043_v14, %v4389_v60 }
 0x312   : > { %3527 = vpow2.f32 %v2598_v16  ;;  %v2566_v48 = vmax.f32 %v4397_v18, -4.0  ;;  %v4402_v22 = vadd.f32 %v3107_v15, %v2411_v20  ;;  %v3044_v23 = vpop.f32.mrb[72].mxu0  ;;  %v3108_v51 = vpop.f32.mrb[72].mxu1 }
 0x313   : > { %v3045_v24 = vpop.f32.mrb[73].mxu0  ;;  %v3109_v25 = vpop.f32.mrb[73].mxu1 }
 0x314   : > { %v2582_v27 = vmin.f32 %v2566_v48, 15.0  ;;  %v2567_v28 = vmax.f32 %v4402_v22, -4.0  ;;  %v3046_v29 = vadd.f32 %v3045_v24, %v3044_v23  ;;  %v3110_v26 = vadd.f32 %v3109_v25, %v3108_v51  ;;  %v3047_v34 = vpop.f32.mrb[74].mxu0  ;;  %v3111_v40 = vpop.f32.mrb[74].mxu1 }
 0x315   : > { %v3048_v41 = vpop.f32.mrb[75].mxu0  ;;  %v3112_v43 = vpop.f32.mrb[75].mxu1 }
 0x316   : > { %v2600_v31 = vmul.f32 1.442695, %v2582_v27  ;;  %v2583_v44 = vmin.f32 %v2567_v28, 15.0  ;;  %v2416_v45 = vadd.f32 %v3046_v29, %v4389_v60  ;;  %v3049_v0 = vadd.f32 %v3048_v41, %v3047_v34 }
 0x317   : > { %v3113_v9 = vadd.f32 %v3112_v43, %v3111_v40 }
 0x318   : > { %3529 = vpow2.f32 %v2600_v31  ;;  %v2602_v46 = vmul.f32 1.442695, %v2583_v44  ;;  %v4406_v47 = vadd.f32 %v3110_v26, %v2416_v45  ;;  %v2419_v36 = vadd.f32 %v3049_v0, %v4389_v60 }
 0x31a   : > { %v3526_v49 = vpop.eup %3525  ;;  %3531 = vpow2.f32 %v2602_v46  ;;  %v2568_v8 = vmax.f32 %v4406_v47, -4.0  ;;  %v4414_v50 = vadd.f32 %v3113_v9, %v2419_v36  ;;  %v3050_v58 = vpop.f32.mrb[76].mxu0 }
 0x31b   : > { %v3114_v52 = vpop.f32.mrb[76].mxu1  ;;  %v3051_v7 = vpop.f32.mrb[77].mxu0  ;;  %v4418_v53 = vsel %vm4409_vm3, %v3526_v49, %v2497_v17 }
 0x31c   : > { %v3115_v56 = vpop.f32.mrb[77].mxu1  ;;  %v3528_v37 = vpop.eup %3527  ;;  %v2584_v55 = vmin.f32 %v2568_v8, 15.0  ;;  %v2569_v57 = vmax.f32 %v4414_v50, -4.0  ;;  %v3052_v59 = vadd.f32 %v3051_v7, %v3050_v58  ;;  %2644 = vrot.lane.b32.xlu0 %v4418_v53, %s3601_s30 }
 0x31d   : > { %v3116_v54 = vadd.f32 %v3115_v56, %v3114_v52  ;;  %v3053_v30 = vpop.f32.mrb[78].mxu0  ;;  %v3117_v38 = vpop.f32.mrb[78].mxu1  ;;  %v4427_v3 = vsel %vm4409_vm3, %v3528_v37, %v4393_v62 }
 0x31e   : > { %v3054_v19 = vpop.f32.mrb[79].mxu0  ;;  %v3118_v61 = vpop.f32.mrb[79].mxu1  ;;  %v2604_v63 = vmul.f32 1.442695, %v2584_v55  ;;  %v2585_v1 = vmin.f32 %v2569_v57, 15.0  ;;  %v2424_v33 = vadd.f32 %v3052_v59, %v4389_v60 }
 0x31f   : > { %v3055_v17 = vadd.f32 %v3054_v19, %v3053_v30  ;;  %v3119_v2 = vadd.f32 %v3118_v61, %v3117_v38 }
 0x320   : > { %3533 = vpow2.f32 %v2604_v63  ;;  %v2606_v39 = vmul.f32 1.442695, %v2585_v1  ;;  %v4429_v4 = vadd.f32 %v3116_v54, %v2424_v33  ;;  %2646 = vrot.lane.b32.xlu0 %v4427_v3, %s3601_s30 }
 0x321   : > { %v2427_v6 = vadd.f32 %v3055_v17, %v4389_v60 }
 0x322   : > { %v3530_v35 = vpop.eup %3529  ;;  %3535 = vpow2.f32 %v2606_v39  ;;  %v2570_v32 = vmax.f32 %v4429_v4, -4.0  ;;  %v3056_v10 = vpop.f32.mrb[80].mxu0 }
 0x323   : > { %v4435_v42 = vadd.f32 %v3119_v2, %v2427_v6  ;;  %v3120_v11 = vpop.f32.mrb[80].mxu1  ;;  %v3057_v12 = vpop.f32.mrb[81].mxu0  ;;  %v4440_v13 = vsel %vm4409_vm3, %v3530_v35, %v4397_v18 }
 0x324   : > { %v3121_v62 = vpop.f32.mrb[81].mxu1  ;;  %v3532_v14 = vpop.eup %3531  ;;  %v2586_v15 = vmin.f32 %v2570_v32, 15.0  ;;  %v3058_v20 = vadd.f32 %v3057_v12, %v3056_v10  ;;  %2648 = vrot.lane.b32.xlu1 %v4440_v13, %s3601_s30 }
 0x325   : > { %v2571_v16 = vmax.f32 %v4435_v42, -4.0  ;;  %v3122_v21 = vadd.f32 %v3121_v62, %v3120_v11  ;;  %v3059_v48 = vpop.f32.mrb[82].mxu0  ;;  %v3123_v23 = vpop.f32.mrb[82].mxu1  ;;  %v4449_v26 = vsel %vm4409_vm3, %v3532_v14, %v4402_v22 }
 0x326   : > { %v3060_v51 = vpop.f32.mrb[83].mxu0  ;;  %v3124_v24 = vpop.f32.mrb[83].mxu1  ;;  %v2608_v25 = vmul.f32 1.442695, %v2586_v15  ;;  %v2432_v28 = vadd.f32 %v3058_v20, %v4389_v60 }
 0x327   : > { %v2587_v27 = vmin.f32 %v2571_v16, 15.0  ;;  %v3061_v29 = vadd.f32 %v3060_v51, %v3059_v48  ;;  %v3125_v18 = vadd.f32 %v3124_v24, %v3123_v23 }
 0x328   : > { %3537 = vpow2.f32 %v2608_v25  ;;  %v4451_v40 = vadd.f32 %v3122_v21, %v2432_v28  ;;  %2650 = vrot.lane.b32.xlu1 %v4449_v26, %s3601_s30 }
 0x329   : > { %v2610_v34 = vmul.f32 1.442695, %v2587_v27  ;;  %v2435_v41 = vadd.f32 %v3061_v29, %v4389_v60 }
 0x32a   : > { %v3534_v43 = vpop.eup %3533  ;;  %v2572_v31 = vmax.f32 %v4451_v40, -4.0  ;;  %v3062_v45 = vpop.f32.mrb[84].mxu0 }
 0x32b   : > { %3539 = vpow2.f32 %v2610_v34  ;;  %v4457_v44 = vadd.f32 %v3125_v18, %v2435_v41  ;;  %v3126_v0 = vpop.f32.mrb[84].mxu1  ;;  %v3063_v9 = vpop.f32.mrb[85].mxu0  ;;  %v4462_v46 = vsel %vm4409_vm3, %v3534_v43, %v4406_v47 }
 0x32c   : > { %v3127_v22 = vpop.f32.mrb[85].mxu1  ;;  %v3536_v36 = vpop.eup %3535  ;;  %v2588_v49 = vmin.f32 %v2572_v31, 15.0  ;;  %v3064_v58 = vadd.f32 %v3063_v9, %v3062_v45  ;;  %2652 = vrot.lane.b32.xlu0 %v4462_v46, %s3601_s30 }
 0x32d   : > { %v2573_v8 = vmax.f32 %v4457_v44, -4.0  ;;  %v3128_v52 = vadd.f32 %v3127_v22, %v3126_v0  ;;  %v3065_v7 = vpop.f32.mrb[86].mxu0  ;;  %v3129_v56 = vpop.f32.mrb[86].mxu1  ;;  %v4470_v57 = vsel %vm4409_vm3, %v3536_v36, %v4414_v50 }
 0x32e   : > { %v3066_v37 = vpop.f32.mrb[87].mxu0  ;;  %v3130_v55 = vpop.f32.mrb[87].mxu1  ;;  %v2612_v47 = vmul.f32 1.442695, %v2588_v49  ;;  %v2440_v54 = vadd.f32 %v3064_v58, %v4389_v60  ;;  %2654 = vrot.lane.b32.xlu1 %v4470_v57, %s3601_s30 }
 0x32f   : > { %v2589_v59 = vmin.f32 %v2573_v8, 15.0  ;;  %v3067_v30 = vadd.f32 %v3066_v37, %v3065_v7  ;;  %v3131_v38 = vadd.f32 %v3130_v55, %v3129_v56 }
 0x330   : > { %3541 = vpow2.f32 %v2612_v47  ;;  %v4475_v61 = vadd.f32 %v3128_v52, %v2440_v54 }
 0x331   : > { %v2614_v19 = vmul.f32 1.442695, %v2589_v59  ;;  %v2443_v63 = vadd.f32 %v3067_v30, %v4389_v60 }
 0x332   : > { %v3538_v1 = vpop.eup %3537  ;;  %v2574_v50 = vmax.f32 %v4475_v61, -4.0  ;;  %v3068_v17 = vpop.f32.mrb[88].mxu0 }
 0x333   : > { %3543 = vpow2.f32 %v2614_v19  ;;  %v4479_v33 = vadd.f32 %v3131_v38, %v2443_v63  ;;  %v3132_v2 = vpop.f32.mrb[88].mxu1  ;;  %v3069_v39 = vpop.f32.mrb[89].mxu0  ;;  %v4484_v35 = vsel %vm4409_vm3, %v3538_v1, %v4429_v4 }
 0x334   : > { %v3133_v6 = vpop.f32.mrb[89].mxu1  ;;  %v2590_v10 = vmin.f32 %v2574_v50, 15.0  ;;  %v3070_v12 = vadd.f32 %v3069_v39, %v3068_v17  ;;  %v3071_v14 = vpop.f32.mrb[90].mxu0  ;;  %2656 = vrot.lane.b32.xlu0 %v4484_v35, %s3601_s30 }
 0x335   : > { %v3540_v32 = vpop.eup %3539  ;;  %v2575_v11 = vmax.f32 %v4479_v33, -4.0  ;;  %v3134_v62 = vadd.f32 %v3133_v6, %v3132_v2  ;;  %v3135_v15 = vpop.f32.mrb[90].mxu1 }
 0x336   : > { %v3072_v16 = vpop.f32.mrb[91].mxu0  ;;  %v3136_v20 = vpop.f32.mrb[91].mxu1  ;;  %v4492_v21 = vsel %vm4409_vm3, %v3540_v32, %v4435_v42  ;;  %v2616_v4 = vmul.f32 1.442695, %v2590_v10  ;;  %v2448_v23 = vadd.f32 %v3070_v12, %v4389_v60 }
 0x337   : > { %v2591_v48 = vmin.f32 %v2575_v11, 15.0  ;;  %v3073_v51 = vadd.f32 %v3072_v16, %v3071_v14  ;;  %2658 = vrot.lane.b32.xlu1 %v4492_v21, %s3601_s30  ;;  %v3137_v24 = vadd.f32 %v3136_v20, %v3135_v15  ;;  %v2676_v16 = vld [vmem:[%s4556_s26] sm:$0xff] }
 0x338   : > { %3545 = vpow2.f32 %v2616_v4  ;;  %v2545_v27 = vadd.f32 %v3134_v62, %v2448_v23 }
 0x339   : > { %v2618_v25 = vmul.f32 1.442695, %v2591_v48  ;;  %v2451_v28 = vadd.f32 %v3073_v51, %v4389_v60 }
 0x33a   : > { %v3542_v29 = vpop.eup %3541  ;;  %v2576_v18 = vmax.f32 %v2545_v27, -4.0  ;;  %v3074_v42 = vpop.f32.mrb[92].mxu0 }
 0x33b   : > { %3547 = vpow2.f32 %v2618_v25  ;;  %v2548_v34 = vadd.f32 %v3137_v24, %v2451_v28  ;;  %v3138_v41 = vpop.f32.mrb[92].mxu1  ;;  %v3075_v43 = vpop.f32.mrb[93].mxu0  ;;  %v4501_v45 = vsel %vm4409_vm3, %v3542_v29, %v4451_v40  ;;  %v2678_v24 = vld [vmem:[%s4556_s26 + $0x10] sm:$0xff]  ;;  %v2679_v29 = vld [vmem:[%s4556_s26 + $0x18] sm:$0xff] }
 0x33c   : > { %v3139_v31 = vpop.f32.mrb[93].mxu1  ;;  %v2592_v9 = vmin.f32 %v2576_v18, 15.0  ;;  %v3076_v36 = vadd.f32 %v3075_v43, %v3074_v42  ;;  %v3077_v8 = vpop.f32.mrb[94].mxu0  ;;  %2660 = vrot.lane.b32.xlu0 %v4501_v45, %s3601_s30  ;;  %v2680_v42 = vld [vmem:[%s4556_s26 + $0x20] sm:$0xff] }
 0x33d   : > { %v3544_v0 = vpop.eup %3543  ;;  %v2577_v22 = vmax.f32 %v2548_v34, -4.0  ;;  %v3140_v49 = vadd.f32 %v3139_v31, %v3138_v41  ;;  %v3141_v58 = vpop.f32.mrb[94].mxu1  ;;  %v2681_v31 = vld [vmem:[%s4556_s26 + $0x28] sm:$0xff] }
 0x33e   : > { %v3078_v52 = vpop.f32.mrb[95].mxu0  ;;  %v3142_v7 = vpop.f32.mrb[95].mxu1  ;;  %v4508_v56 = vsel %vm4409_vm3, %v3544_v0, %v4457_v44  ;;  %v2620_v37 = vmul.f32 1.442695, %v2592_v9  ;;  %v2456_v55 = vadd.f32 %v3076_v36, %v4389_v60  ;;  %v2682_v36 = vld [vmem:[%s4556_s26 + $0x30] sm:$0xff] }
 0x33f   : > { %v2593_v40 = vmin.f32 %v2577_v22, 15.0  ;;  %v3079_v47 = vadd.f32 %v3078_v52, %v3077_v8  ;;  %2662 = vrot.lane.b32.xlu1 %v4508_v56, %s3601_s30  ;;  %v3143_v59 = vadd.f32 %v3142_v7, %v3141_v58 }
 0x340   : > { %3549 = vpow2.f32 %v2620_v37  ;;  %v2553_v30 = vadd.f32 %v3140_v49, %v2456_v55  ;;  %v2684_v37 = vld [vmem:[%s4556_s26 + $0x40] sm:$0xff] }
 0x341   : > { %v2622_v54 = vmul.f32 1.442695, %v2593_v40  ;;  %v2459_v38 = vadd.f32 %v3079_v47, %v4389_v60 }
 0x342   : > { %v3546_v19 = vpop.eup %3545  ;;  %v2578_v63 = vmax.f32 %v2553_v30, -4.0 }
 0x343   : > { %3551 = vpow2.f32 %v2622_v54  ;;  %v2556_v1 = vadd.f32 %v3143_v59, %v2459_v38  ;;  %v4517_v44 = vsel %vm4409_vm3, %v3546_v19, %v4475_v61 }
 0x344   : > { %v2594_v17 = vmin.f32 %v2578_v63, 15.0  ;;  %2664 = vrot.lane.b32.xlu0 %v4517_v44, %s3601_s30 }
 0x345   : > { %v3548_v50 = vpop.eup %3547  ;;  %v2579_v2 = vmax.f32 %v2556_v1, -4.0 }
 0x346   : > { %v4524_v39 = vsel %vm4409_vm3, %v3548_v50, %v4479_v33  ;;  %v2624_v60 = vmul.f32 1.442695, %v2594_v17  ;;  %v2688_v17 = vld [vmem:[%s4556_s26 + $0x60] sm:$0xff] }
 0x347   : > { %v2595_v6 = vmin.f32 %v2579_v2, 15.0  ;;  %2666 = vrot.lane.b32.xlu1 %v4524_v39, %s3601_s30 }
 0x348   : > { %3553 = vpow2.f32 %v2624_v60 }
 0x349   : > { %v2626_v61 = vmul.f32 1.442695, %v2595_v6 }
 0x34a   : > { %v3550_v32 = vpop.eup %3549 }
 0x34b   : > { %3555 = vpow2.f32 %v2626_v61  ;;  %v4530_v10 = vsel %vm4409_vm3, %v3550_v32, %v2545_v27 }
 0x34c   : > { %2668 = vrot.lane.b32.xlu0 %v4530_v10, %s3601_s30 }
 0x34d   : > { %v3552_v11 = vpop.eup %3551 }
 0x34e   : > { %v4536_v33 = vsel %vm4409_vm3, %v3552_v11, %v2548_v34 }
 0x34f   : > { %2670 = vrot.lane.b32.xlu1 %v4536_v33, %s3601_s30 }
 0x352   : > { %v3554_v12 = vpop.eup %3553 }
 0x353   : > { %v4542_v62 = vsel %vm4409_vm3, %v3554_v12, %v2553_v30  ;;  %v2686_v30 = vld [vmem:[%s4556_s26 + $0x50] sm:$0xff] }
 0x354   : > { %2672 = vrot.lane.b32.xlu0 %v4542_v62, %s3601_s30 }
 0x355   : > { %v3556_v14 = vpop.eup %3555 }
 0x356   : > { %v4548_v15 = vsel %vm4409_vm3, %v3556_v14, %v2556_v1  ;;  %v2691_v14 = vld [vmem:[%s4556_s26 + $0x78] sm:$0xff] }
 0x357   : > { %2674 = vrot.lane.b32.xlu1 %v4548_v15, %s3601_s30 }
 0x38e   : > { %v2645_v20 = vpop.permute.xlu0 %2644 }
 0x38f   : > { %v2692_v4 = vmul.f32 %v2676_v16, %v2645_v20 }
 0x391   : > { %v2708_v48 = vadd.f32 %v2692_v4, %v4418_v53 }
 0x392   : > { %v2647_v23 = vpop.permute.xlu0 %2646 }
 0x393   : > { %2724 = vst [vmem:[%s4563_s10] sm:$0xff] %v2708_v48  ;;  %v2693_v51 = vmul.f32 %v2677_v5, %v2647_v23 }
 0x395   : > { %v2709_v25 = vadd.f32 %v2693_v51, %v4427_v3 }
 0x396   : > { %v2649_v27 = vpop.permute.xlu1 %2648 }
 0x397   : > { %2725 = vst [vmem:[%s4563_s10 + $0x8] sm:$0xff] %v2709_v25  ;;  %v2694_v28 = vmul.f32 %v2678_v24, %v2649_v27 }
 0x399   : > { %v2710_v18 = vadd.f32 %v2694_v28, %v4440_v13 }
 0x39a   : > { %v2651_v34 = vpop.permute.xlu1 %2650 }
 0x39b   : > { %2726 = vst [vmem:[%s4563_s10 + $0x10] sm:$0xff] %v2710_v18  ;;  %v2695_v53 = vmul.f32 %v2679_v29, %v2651_v34 }
 0x39d   : > { %v2711_v41 = vadd.f32 %v2695_v53, %v4449_v26  ;;  %v2683_v26 = vld [vmem:[%s4556_s26 + $0x38] sm:$0xff] }
 0x39e   : > { %v2653_v43 = vpop.permute.xlu0 %2652 }
 0x39f   : > { %2727 = vst [vmem:[%s4563_s10 + $0x18] sm:$0xff] %v2711_v41  ;;  %v2696_v3 = vmul.f32 %v2680_v42, %v2653_v43 }
 0x3a0   : > { %v2655_v0 = vpop.permute.xlu1 %2654 }
 0x3a1   : > { %v2712_v9 = vadd.f32 %v2696_v3, %v4462_v46  ;;  %v2697_v22 = vmul.f32 %v2681_v31, %v2655_v0 }
 0x3a3   : > { %2728 = vst [vmem:[%s4563_s10 + $0x20] sm:$0xff] %v2712_v9  ;;  %v2713_v13 = vadd.f32 %v2697_v22, %v4470_v57  ;;  %v2685_v57 = vld [vmem:[%s4556_s26 + $0x48] sm:$0xff] }
 0x3a5   : > { %2729 = vst [vmem:[%s4563_s10 + $0x28] sm:$0xff] %v2713_v13 }
 0x3a6   : > { %v2657_v49 = vpop.permute.xlu0 %2656 }
 0x3a7   : > { %v2698_v8 = vmul.f32 %v2682_v36, %v2657_v49 }
 0x3a9   : > { %v2659_v58 = vpop.permute.xlu1 %2658  ;;  %v2714_v52 = vadd.f32 %v2698_v8, %v4484_v35 }
 0x3aa   : > { %v2699_v7 = vmul.f32 %v2683_v26, %v2659_v58 }
 0x3ab   : > { %2730 = vst [vmem:[%s4563_s10 + $0x30] sm:$0xff] %v2714_v52 }
 0x3ac   : > { %v2715_v46 = vadd.f32 %v2699_v7, %v4492_v21  ;;  %v2687_v21 = vld [vmem:[%s4556_s26 + $0x58] sm:$0xff] }
 0x3ae   : > { %2731 = vst [vmem:[%s4563_s10 + $0x38] sm:$0xff] %v2715_v46  ;;  %v2661_v40 = vpop.permute.xlu0 %2660 }
 0x3af   : > { %v2700_v55 = vmul.f32 %v2684_v37, %v2661_v40 }
 0x3b1   : > { %v2663_v47 = vpop.permute.xlu1 %2662  ;;  %v2716_v59 = vadd.f32 %v2700_v55, %v4501_v45 }
 0x3b2   : > { %v2701_v54 = vmul.f32 %v2685_v57, %v2663_v47 }
 0x3b3   : > { %2732 = vst [vmem:[%s4563_s10 + $0x40] sm:$0xff] %v2716_v59 }
 0x3b4   : > { %v2717_v35 = vadd.f32 %v2701_v54, %v4508_v56  ;;  %v2689_v56 = vld [vmem:[%s4556_s26 + $0x68] sm:$0xff] }
 0x3b6   : > { %2733 = vst [vmem:[%s4563_s10 + $0x48] sm:$0xff] %v2717_v35  ;;  %v2665_v38 = vpop.permute.xlu0 %2664 }
 0x3b7   : > { %v2702_v19 = vmul.f32 %v2686_v30, %v2665_v38 }
 0x3b9   : > { %v2667_v63 = vpop.permute.xlu1 %2666  ;;  %v2718_v1 = vadd.f32 %v2702_v19, %v4517_v44  ;;  %v2690_v44 = vld [vmem:[%s4556_s26 + $0x70] sm:$0xff] }
 0x3ba   : > { %v2703_v50 = vmul.f32 %v2687_v21, %v2667_v63 }
 0x3bb   : > { %2734 = vst [vmem:[%s4563_s10 + $0x50] sm:$0xff] %v2718_v1 }
 0x3bc   : > { %v2719_v45 = vadd.f32 %v2703_v50, %v4524_v39 }
 0x3be   : > { %2735 = vst [vmem:[%s4563_s10 + $0x58] sm:$0xff] %v2719_v45  ;;  %v2669_v2 = vpop.permute.xlu0 %2668 }
 0x3bf   : > { %v2704_v60 = vmul.f32 %v2688_v17, %v2669_v2 }
 0x3c1   : > { %v2671_v6 = vpop.permute.xlu1 %2670  ;;  %v2720_v61 = vadd.f32 %v2704_v60, %v4530_v10 }
 0x3c2   : > { %v2705_v32 = vmul.f32 %v2689_v56, %v2671_v6 }
 0x3c3   : > { %2736 = vst [vmem:[%s4563_s10 + $0x60] sm:$0xff] %v2720_v61 }
 0x3c4   : > { %v2721_v11 = vadd.f32 %v2705_v32, %v4536_v33 }
 0x3c6   : > { %2737 = vst [vmem:[%s4563_s10 + $0x68] sm:$0xff] %v2721_v11  ;;  %v2673_v12 = vpop.permute.xlu0 %2672 }
 0x3c7   : > { %v2706_v16 = vmul.f32 %v2690_v44, %v2673_v12 }
 0x3c9   : > { %v2675_v39 = vpop.permute.xlu1 %2674  ;;  %v2722_v20 = vadd.f32 %v2706_v16, %v4542_v62 }
 0x3ca   : > { %v2707_v4 = vmul.f32 %v2691_v14, %v2675_v39 }
 0x3cb   : > { %2738 = vst [vmem:[%s4563_s10 + $0x70] sm:$0xff] %v2722_v20 }
 0x3cc   : > { %v2723_v5 = vadd.f32 %v2707_v4, %v4548_v15 }
 0x3ce   : > { %2739 = vst [vmem:[%s4563_s10 + $0x78] sm:$0xff] %v2723_v5 }
 0x3cf PF: > { %s19_s27 = sadd.s32 1, %s3595_s27  }
 0x3d0   : > { %p16_p3 = scmp.ge.s32.totalorder %s19_s27, 4  }
 0x3d2   :  { %18 = sbr.rel (!%p16_p3) target bundleno = 1 (0x1), region = 90 }
 0x3d9   :  { %2762 = vsyncpa [#allocation3], 1 }
 0x3da   :  { %2764 = vsyncpa [#allocation3 + $0x1], 1 }

</bundles_post_ra>
